<compile_context>
chip_gen: v5e
topology: v5e:2x2
jax: 0.10.0
libtpu: 0.0.40
codegen_flags: <defaults>
</compile_context>

<pallas_src>
import functools
import math

import jax
import jax.numpy as jnp
from jax.experimental import pallas as pl
from jax.experimental.pallas import tpu as pltpu


# ----------------------------------------------------------------------------
# Fused kernel: cached binarized blend + im2col + single MXU dot per grid step.
# ----------------------------------------------------------------------------
def _ewconv_kernel(x_ref, w_ref, o_ref, wblend_ref, *,
                   row_band, Wo, KH, KW, C, stride, dilation):
    sh, sw = stride
    dh, dw = dilation

    # Blended weight cached in VMEM; recomputed only at band == 0 of each (o_tile, image).
    # Safe under megacore splitting of the two parallel axes because the band axis is the
    # innermost "arbitrary" axis (every core's chunk starts at band == 0).
    @pl.when(pl.program_id(2) == 0)
    def _():
        # w_ref[0] = pre-binarized (exactly 0/1) mask, w_ref[1] = place365, w_ref[2] = imagenet.
        wblend_ref[...] = jnp.where(w_ref[0] > 0.5, w_ref[1], w_ref[2])

    x = x_ref[...]                                     # (rows_in, Wp, C)

    # im2col for this row band: one shifted (strided) patch per tap, concatenated along the
    # channel (lane) axis, then a SINGLE reshape to 2-D -> one MXU contraction over KH*KW*C.
    # TODO(synk): for stride > 1, pre-decimate the W axis per kw-phase in the wrapper so the
    #             strided slice below does not lower to XLU sublane gathers per tap.
    patches = []
    for kh in range(KH):
        for kw in range(KW):
            h0 = kh * dh
            w0 = kw * dw
            patches.append(jax.lax.slice(
                x,
                (h0, w0, 0),
                (h0 + (row_band - 1) * sh + 1, w0 + (Wo - 1) * sw + 1, C),
                (sh, sw, 1)))                          # (row_band, Wo, C)
    xcol = jnp.concatenate(patches, axis=-1)           # (row_band, Wo, KH*KW*C)
    xcol = xcol.reshape(row_band * Wo, KH * KW * C)    # one reshape, not one per tap

    # One MXU contraction, f32 accumulation in vregs, single lane-dense store.
    acc = jnp.dot(xcol, wblend_ref[...], preferred_element_type=jnp.float32)
    o_ref[...] = acc.astype(o_ref.dtype)               # (row_band*Wo, TO)


# ----------------------------------------------------------------------------
# Wrapper helpers.
# ----------------------------------------------------------------------------
def _round_up(x, m):
    return (x + m - 1) // m * m


def _tpu_generation():
    try:
        kind = jax.devices()[0].device_kind.lower()
    except Exception:
        return None
    if "v7" in kind or "tpu7" in kind:
        return "v7"
    if "v6" in kind or "tpu6" in kind:
        return "v6"
    if "v5" in kind:
        return "v5"
    if "v4" in kind:
        return "v4"
    return None


_GEN_VMEM_CFG = {
    # generation: (row-band working-set budget, vmem_limit_bytes handed to Mosaic)
    "v4": (12 << 20, 64 << 20),
    "v5": (10 << 20, 64 << 20),    # 16 MiB default scoped / 128 MiB physical
    "v6": (28 << 20, 100 << 20),   # 32 MiB default scoped / 128 MiB physical
    "v7": (20 << 20, 48 << 20),    # 64 MiB physical per TC -> leave double-buffer headroom
}
_DEFAULT_VMEM_CFG = (8 << 20, None)


def _pick_band_rows(Ho, Wo, Wp, C, KH, KW, TO, sh, dh, csize, osize, budget):
    """Largest output-row band whose per-step working set fits the VMEM budget.

    Accounting matches the actual grid order: x band and output band vary per step (2x for
    double buffering), the stacked weight block is counted at its real dtype (2x to be safe),
    plus the blended-weight scratch, the im2col temporaries and the f32 accumulator.
    """
    ktot = KH * KW * C
    th = Ho
    while True:
        th_in = (th - 1) * sh + (KH - 1) * dh + 1
        m = th * Wo
        x_b = 2 * th_in * Wp * C * csize          # input band (double-buffered)
        out_b = 2 * m * TO * osize                # output band (double-buffered)
        w_b = 2 * 3 * ktot * TO * csize           # stacked mask/place/imagenet block
        wbl_b = ktot * TO * csize                 # blended-weight VMEM scratch
        col_b = 2 * m * ktot * csize              # patches + concatenated im2col temp
        acc_b = m * TO * 4                        # f32 accumulator
        total = x_b + out_b + w_b + wbl_b + col_b + acc_b
        if total <= budget or th <= 1:
            return max(1, th)
        th = max(1, th // 2)
    # TODO(synk): add W and contraction (C) tiling for layers too wide to fit a single row.


# ----------------------------------------------------------------------------
# Wrapper: PyTorch NCHW / OIHW in, NCHW (or NHWC) out.
# ----------------------------------------------------------------------------
def element_wise_conv2d_forward(x_nchw, imagenet_w, place365_w, mask_real,
                                stride=(1, 1), padding=(0, 0), dilation=(1, 1),
                                compute_dtype=None, row_band=None, out_layout="NCHW"):
    # TODO(synk): groups > 1 and bias not implemented (module defaults: groups=1, bias=False).
    # TODO(synk): forward only; the Binarizer straight-through backward needs jax.custom_vjp.
    N, C, H, W = x_nchw.shape
    O, Cw, KH, KW = imagenet_w.shape
    assert Cw == C, "groups != 1 not supported"
    sh, sw = stride
    ph, pw = padding
    dh, dw = dilation

    out_dtype = x_nchw.dtype
    cdt = compute_dtype or x_nchw.dtype       # jnp.bfloat16 recommended on v6e/v7x
    csize = jnp.dtype(cdt).itemsize
    osize = jnp.dtype(out_dtype).itemsize

    gen = _tpu_generation()
    budget, vmem_limit = _GEN_VMEM_CFG.get(gen, _DEFAULT_VMEM_CFG)

    # NCHW -> NHWC (channels on lanes) + spatial zero padding (plain-JAX glue).
    x_nhwc = jnp.transpose(x_nchw, (0, 2, 3, 1))
    xp = jnp.pad(x_nhwc, ((0, 0), (ph, ph), (pw, pw), (0, 0))).astype(cdt)
    Hp, Wp = H + 2 * ph, W + 2 * pw
    Ho = (Hp - dh * (KH - 1) - 1) // sh + 1
    Wo = (Wp - dw * (KW - 1) - 1) // sw + 1

    # Output-channel tile: 256 on the 256-wide v6e/v7x MXU when it pays, else 128 (v5e MXU width).
    TO = 256 if (gen in ("v6", "v7") and O > 128) else 128
    O_pad = _round_up(O, TO)
    num_o_tiles = O_pad // TO
    # TODO(synk): if N == 1 and num_o_tiles == 1 on v7x, split the image into two W halves so
    #             the second TensorCore gets work.

    # Output-row band from the per-generation VMEM budget (or explicit override).
    if row_band is None:
        row_band = _pick_band_rows(Ho, Wo, Wp, C, KH, KW, TO, sh, dh, csize, osize, budget)
        if row_band < Ho:
            # Prefer M_band = row_band*Wo to be a multiple of 8 -> unmasked sublane stores.
            r8 = 8 // math.gcd(Wo, 8)
            if row_band >= r8:
                row_band -= row_band % r8
    row_band = max(1, min(row_band, Ho))
    num_bands = -(-Ho // row_band)
    rows_in = (row_band - 1) * sh + (KH - 1) * dh + 1
    M_band = row_band * Wo
    Ktot = KH * KW * C

    if num_bands == 1:
        # Whole padded image fits one band: tile xp directly -- no halo gather, no extra HBM pass.
        x_in = xp[:, :rows_in]                                       # (N, rows_in, Wp, C)
        x_spec = pl.BlockSpec((None, rows_in, Wp, C), lambda o, n, b: (n, 0, 0, 0))
    else:
        # Halo'd row bands (one extra pass over the input in HBM).
        # TODO(synk): replace with an overlapping-window BlockSpec (pl.Element on H) or a manual
        #             double-buffered DMA from a pl.ANY-space xp to remove this pass entirely.
        Hp_need = (num_bands - 1) * row_band * sh + rows_in
        xp = jnp.pad(xp, ((0, 0), (0, max(0, Hp_need - Hp)), (0, 0), (0, 0)))
        starts = jnp.arange(num_bands) * (row_band * sh)
        rows = starts[:, None] + jnp.arange(rows_in)[None, :]        # (num_bands, rows_in)
        x_in = xp[:, rows]                                           # (N, bands, rows_in, Wp, C)
        x_spec = pl.BlockSpec((None, None, rows_in, Wp, C), lambda o, n, b: (n, b, 0, 0, 0))

    # Weights: binarize the mask ONCE in f32 (exact 0.5 threshold), then stack
    # [mask, place365, imagenet] into a single lane-padded (3, KH*KW*C, O_pad) tensor so the
    # kernel gets ONE resident weight DMA per o-tile.
    def to_2d(w_oihw):
        w2 = jnp.transpose(w_oihw, (2, 3, 1, 0)).reshape(Ktot, O)    # (kh, kw, c) major->minor
        return jnp.pad(w2, ((0, 0), (0, O_pad - O))).astype(cdt)

    mask_bin = (mask_real > 0.5).astype(jnp.float32)
    w_stack = jnp.stack([to_2d(mask_bin), to_2d(place365_w), to_2d(imagenet_w)], axis=0)

    kernel = functools.partial(
        _ewconv_kernel, row_band=row_band, Wo=Wo, KH=KH, KW=KW, C=C,
        stride=(sh, sw), dilation=(dh, dw))

    out = pl.pallas_call(
        kernel,
        out_shape=jax.ShapeDtypeStruct((N, num_bands, M_band, O_pad), out_dtype),
        grid_spec=pltpu.PrefetchScalarGridSpec(
            num_scalar_prefetch=0,
            grid=(num_o_tiles, N, num_bands),              # band axis innermost ("arbitrary")
            in_specs=[
                x_spec,
                pl.BlockSpec((3, Ktot, TO), lambda o, n, b: (0, 0, o)),  # resident per o-tile
            ],
            out_specs=pl.BlockSpec((None, None, M_band, TO), lambda o, n, b: (n, b, 0, o)),
            scratch_shapes=[pltpu.VMEM((Ktot, TO), cdt)],  # blended-weight cache
        ),
        compiler_params=pltpu.CompilerParams(
            dimension_semantics=("parallel", "parallel", "arbitrary"),
            vmem_limit_bytes=vmem_limit),
    )(x_in, w_stack)

    # (N, bands, row_band*Wo, O_pad) -> (N, Ho_pad, Wo, O_pad) [free reshape] -> crop pads.
    out = out.reshape(N, num_bands * row_band, Wo, O_pad)[:, :Ho, :, :O]
    if out_layout == "NHWC":
        return out      # skip the extra HBM pass of the NCHW transpose when the consumer allows
    return jnp.transpose(out, (0, 3, 1, 2))


if __name__ == "__main__":
    # Small shapes consistent with the module: batch=2, in_ch=4, out_ch=8, 16x16, k=3.
    N, Cin, Cout, H, W, K = 2, 4, 8, 16, 16, 3

    key = jax.random.PRNGKey(0)
    k1, k2, k3, k4 = jax.random.split(key, 4)
    x = jax.random.normal(k1, (N, Cin, H, W), dtype=jnp.float32)
    imagenet_w = jax.random.normal(k2, (Cout, Cin, K, K), dtype=jnp.float32) * 0.1
    place365_w = jax.random.normal(k3, (Cout, Cin, K, K), dtype=jnp.float32) * 0.1
    # Module default init is uniform(-0.01, 0.01) (all binarize to 0). Use a wider deterministic
    # uniform so both binarizer branches are exercised.
    mask_real = jax.random.uniform(k4, (Cout, Cin, K, K), dtype=jnp.float32,
                                   minval=-1.0, maxval=1.0)

    # Plain-JAX reference (same math as the PyTorch forward).
    mask_bin = jnp.where(mask_real > 0.5, 1.0, 0.0)
    w_ref = mask_bin * place365_w + (1.0 - mask_bin) * imagenet_w

    def ref_conv(xa, wa, stride, padding, dilation):
        return jax.lax.conv_general_dilated(
            xa, wa, window_strides=stride,
            padding=[(padding[0], padding[0]), (padding[1], padding[1])],
            rhs_dilation=dilation,
            dimension_numbers=("NCHW", "OIHW", "NCHW"))

    # 1) Module defaults (stride=1, padding=0, dilation=1): single band, no halo gather, f32.
    out = jax.block_until_ready(
        element_wise_conv2d_forward(x, imagenet_w, place365_w, mask_real))
    ref = ref_conv(x, w_ref, (1, 1), (0, 0), (1, 1))
    assert out.shape == (N, Cout, H - K + 1, W - K + 1), out.shape
    assert jnp.allclose(out, ref, atol=1e-4, rtol=1e-4), "mismatch vs reference (defaults)"

    # 2) padding=1, dilation=2, forced small row band -> multi-band halo path, ragged last band.
    out2 = jax.block_until_ready(
        element_wise_conv2d_forward(x, imagenet_w, place365_w, mask_real,
                                    stride=(1, 1), padding=(1, 1), dilation=(2, 2),
                                    row_band=6))
    ref2 = ref_conv(x, w_ref, (1, 1), (1, 1), (2, 2))
    assert out2.shape == ref2.shape, (out2.shape, ref2.shape)
    assert jnp.allclose(out2, ref2, atol=1e-4, rtol=1e-4), "mismatch vs reference (banded)"

    # 3) bf16 compute path (recommended default on v6e/v7x); accumulation stays f32.
    out3 = jax.block_until_ready(
        element_wise_conv2d_forward(x, imagenet_w, place365_w, mask_real,
                                    compute_dtype=jnp.bfloat16))
    assert jnp.allclose(out3, ref, atol=5e-2, rtol=5e-2), "mismatch vs reference (bf16)"

    print("KERNEL_OK")
</pallas_src>

<mosaic_0001>
module attributes {stable_mosaic.version = 11 : i64} {
  func.func @_ewconv_kernel(%arg0: i32, %arg1: i32, %arg2: i32, %arg3: memref<1x16x16x4xf32, #tpu.memory_space<vmem>>, %arg4: memref<3x36x128xf32, #tpu.memory_space<vmem>>, %arg5: memref<1x1x196x128xf32, #tpu.memory_space<vmem>>, %arg6: memref<36x128xf32, #tpu.memory_space<vmem>>) attributes {dimension_semantics = [#tpu.dimension_semantics<parallel>, #tpu.dimension_semantics<parallel>, #tpu.dimension_semantics<arbitrary>], iteration_bounds = array<i64: 1, 2, 1>, scalar_prefetch = 0 : i64, scratch_operands = 1 : i64, tpu.core_type = #tpu.core_type<tc>, window_params = [{transform_indices = @transform_0, window_bounds = array<i64: 1, 16, 16, 4>}, {transform_indices = @transform_1, window_bounds = array<i64: 3, 36, 128>}, {transform_indices = @transform_2, window_bounds = array<i64: 1, 1, 196, 128>}]} {
    %c0_i32 = arith.constant 0 : i32
    %0 = arith.cmpi eq, %arg2, %c0_i32 : i32
    %1 = arith.extui %0 : i1 to i32
    %c0_i32_0 = arith.constant 0 : i32
    %2 = arith.cmpi ne, %1, %c0_i32_0 : i32
    scf.if %2 {
      %c0_10 = arith.constant 0 : index
      %c0_11 = arith.constant 0 : index
      %c0_12 = arith.constant 0 : index
      %21 = vector.load %arg4[%c0_10, %c0_11, %c0_12] : memref<3x36x128xf32, #tpu.memory_space<vmem>>, vector<1x36x128xf32>
      %22 = vector.shape_cast %21 : vector<1x36x128xf32> to vector<36x128xf32>
      %cst_13 = arith.constant 5.000000e-01 : f32
      %23 = vector.broadcast %cst_13 : f32 to vector<36x128xf32>
      %24 = arith.cmpf ogt, %22, %23 : vector<36x128xf32>
      %c1 = arith.constant 1 : index
      %c0_14 = arith.constant 0 : index
      %c0_15 = arith.constant 0 : index
      %25 = vector.load %arg4[%c1, %c0_14, %c0_15] : memref<3x36x128xf32, #tpu.memory_space<vmem>>, vector<1x36x128xf32>
      %26 = vector.shape_cast %25 : vector<1x36x128xf32> to vector<36x128xf32>
      %c2 = arith.constant 2 : index
      %c0_16 = arith.constant 0 : index
      %c0_17 = arith.constant 0 : index
      %27 = vector.load %arg4[%c2, %c0_16, %c0_17] : memref<3x36x128xf32, #tpu.memory_space<vmem>>, vector<1x36x128xf32>
      %28 = vector.shape_cast %27 : vector<1x36x128xf32> to vector<36x128xf32>
      %29 = arith.select %24, %26, %28 : vector<36x128xi1>, vector<36x128xf32>
      %c0_18 = arith.constant 0 : index
      %c0_19 = arith.constant 0 : index
      %30 = vector.load %arg6[%c0_18, %c0_19] : memref<36x128xf32, #tpu.memory_space<vmem>>, vector<36x128xf32>
      tpu.vector_store %arg6[%c0_18, %c0_19], %29 {strides = array<i32>} : memref<36x128xf32, #tpu.memory_space<vmem>>, vector<36x128xf32>,
    } else {
    }
    %c0 = arith.constant 0 : index
    %c0_1 = arith.constant 0 : index
    %c0_2 = arith.constant 0 : index
    %c0_3 = arith.constant 0 : index
    %3 = vector.load %arg3[%c0, %c0_1, %c0_2, %c0_3] : memref<1x16x16x4xf32, #tpu.memory_space<vmem>>, vector<1x16x16x4xf32>
    %4 = vector.shape_cast %3 : vector<1x16x16x4xf32> to vector<16x16x4xf32>
    %5 = vector.extract_strided_slice %4 {offsets = [0, 0, 0], sizes = [14, 14, 4], strides = [1, 1, 1]} : vector<16x16x4xf32> to vector<14x14x4xf32>
    %6 = vector.extract_strided_slice %4 {offsets = [0, 1, 0], sizes = [14, 14, 4], strides = [1, 1, 1]} : vector<16x16x4xf32> to vector<14x14x4xf32>
    %7 = vector.extract_strided_slice %4 {offsets = [0, 2, 0], sizes = [14, 14, 4], strides = [1, 1, 1]} : vector<16x16x4xf32> to vector<14x14x4xf32>
    %8 = vector.extract_strided_slice %4 {offsets = [1, 0, 0], sizes = [14, 14, 4], strides = [1, 1, 1]} : vector<16x16x4xf32> to vector<14x14x4xf32>
    %9 = vector.extract_strided_slice %4 {offsets = [1, 1, 0], sizes = [14, 14, 4], strides = [1, 1, 1]} : vector<16x16x4xf32> to vector<14x14x4xf32>
    %10 = vector.extract_strided_slice %4 {offsets = [1, 2, 0], sizes = [14, 14, 4], strides = [1, 1, 1]} : vector<16x16x4xf32> to vector<14x14x4xf32>
    %11 = vector.extract_strided_slice %4 {offsets = [2, 0, 0], sizes = [14, 14, 4], strides = [1, 1, 1]} : vector<16x16x4xf32> to vector<14x14x4xf32>
    %12 = vector.extract_strided_slice %4 {offsets = [2, 1, 0], sizes = [14, 14, 4], strides = [1, 1, 1]} : vector<16x16x4xf32> to vector<14x14x4xf32>
    %13 = vector.extract_strided_slice %4 {offsets = [2, 2, 0], sizes = [14, 14, 4], strides = [1, 1, 1]} : vector<16x16x4xf32> to vector<14x14x4xf32>
    %14 = tpu.concatenate %5, %6, %7, %8, %9, %10, %11, %12, %13 in 2 : vector<14x14x4xf32>, vector<14x14x4xf32>, vector<14x14x4xf32>, vector<14x14x4xf32>, vector<14x14x4xf32>, vector<14x14x4xf32>, vector<14x14x4xf32>, vector<14x14x4xf32>, vector<14x14x4xf32> -> vector<14x14x36xf32>
    %15 = vector.shape_cast %14 : vector<14x14x36xf32> to vector<196x36xf32>
    %c0_4 = arith.constant 0 : index
    %c0_5 = arith.constant 0 : index
    %16 = vector.load %arg6[%c0_4, %c0_5] : memref<36x128xf32, #tpu.memory_space<vmem>>, vector<36x128xf32>
    %cst = arith.constant dense<0.000000e+00> : vector<196x128xf32>
    %17 = tpu.matmul %15, %16, %cst {dimension_numbers = #tpu.dot_dimension_numbers<[1], [0], [0], [1], [0, 0, 1, 1], [], []>} : vector<196x36xf32>, vector<36x128xf32>, vector<196x128xf32> -> vector<196x128xf32>
    %c0_6 = arith.constant 0 : index
    %c0_7 = arith.constant 0 : index
    %c0_8 = arith.constant 0 : index
    %c0_9 = arith.constant 0 : index
    %18 = vector.load %arg5[%c0_6, %c0_7, %c0_8, %c0_9] : memref<1x1x196x128xf32, #tpu.memory_space<vmem>>, vector<1x1x196x128xf32>
    %19 = vector.shape_cast %18 : vector<1x1x196x128xf32> to vector<196x128xf32>
    %20 = vector.shape_cast %17 : vector<196x128xf32> to vector<1x1x196x128xf32>
    tpu.vector_store %arg5[%c0_6, %c0_7, %c0_8, %c0_9], %20 {strides = array<i32>} : memref<1x1x196x128xf32, #tpu.memory_space<vmem>>, vector<1x1x196x128xf32>,
    return
  }
  func.func @transform_0(%arg0: i32, %arg1: i32, %arg2: i32) -> (i32, i32, i32, i32) {
    %c0_i32 = arith.constant 0 : i32
    %c0_i32_0 = arith.constant 0 : i32
    %c0_i32_1 = arith.constant 0 : i32
    %c0_i32_2 = arith.constant 0 : i32
    return %arg1, %c0_i32, %c0_i32_0, %c0_i32_1 : i32, i32, i32, i32
  }
  func.func @transform_1(%arg0: i32, %arg1: i32, %arg2: i32) -> (i32, i32, i32) {
    %c0_i32 = arith.constant 0 : i32
    %c0_i32_0 = arith.constant 0 : i32
    %c0_i32_1 = arith.constant 0 : i32
    return %c0_i32, %c0_i32_0, %arg0 : i32, i32, i32
  }
  func.func @transform_2(%arg0: i32, %arg1: i32, %arg2: i32) -> (i32, i32, i32, i32) {
    %c0_i32 = arith.constant 0 : i32
    %c0_i32_0 = arith.constant 0 : i32
    return %arg1, %arg2, %c0_i32, %arg0 : i32, i32, i32, i32
  }
}

</mosaic_0001>

<bundles_post_ra>
// kernel: tpu_custom_call.1
= control target key start
LH: loop header
LB: loop body
LE: loop exit
PB: predicated region body
PF: predicated region fallthrough
CT: control target
= control target key end

     0   :  { %s1980_s9 = smov 0   ;;  %s1982_s10 = smov 0   ;;  %s3534_s0 = inlined_call_operand.vmem [shape: f32[2,16,16,4], index: 0, kind: input, shape index: {}]   ;;  %s3535_s1 = inlined_call_operand.vmem [shape: f32[3,36,128], index: 1, kind: input, shape index: {}]   ;;  %s3536_s2 = inlined_call_operand.vmem [shape: f32[2,1,196,128], index: 2, kind: output, shape index: {}]  }
   0x1   :  { %s1984_s11 = smov 0  }
   0x2 LB: > { %s27_s12 = sadd.s32 1, %s1951_s10  ;;  %p1822_p0 = scmp.ge.s32.totalorder %s1955_s11, 1  ;;  %s1955_s11 = sphi %s1984_s11, %s12_s11   ;;  %s1951_s10 = sphi %s1982_s10, %s3843_s10   ;;  %s1947_s9 = sphi %s1980_s9, %s3842_s9  }
   0x3   : > { %p29_p1 = scmp.ge.s32.totalorder %s27_s12, 2  ;;  %p144_p2 = scmp.lt.s32.totalorder %s1955_s11, 3 }
   0x5   : > { %s3845_s12 = smov (%p29_p1, %s27_s12), 0  ;;  %p145_p3 = pnand %p1822_p0, %p144_p2 }
   0x7   : > { %148 = sbr.rel (%p145_p3) target bundleno = 879 (0x36f), region = 28 }
   0xc   : > { %p177_p4 = scmp.lt.s32.totalorder %s1947_s9, 1  ;;  %s1957_s17 = smov 4   ;;  %vm294_vm0 = vcmask 1046528   ;;  %vm421_vm1 = vcmask 1045504   ;;  %vm1068_vm2 = vcmask 31744   ;;  %vm1097_vm3 = vcmask 64512  }
   0xd   : > { %s1958_s18 = smov 8   ;;  %s1959_s19 = smov 12   ;;  %vm1126_vm4 = vcmask 97280   ;;  %vm1155_vm5 = vcmask 130048   ;;  %vm1184_vm6 = vcmask 162816   ;;  %vm1584_vm8 = vcmask 1043456  }
   0xe   : > { %s3847_s9 = smov (!%p177_p4, %s1947_s9), 1  ;;  %s1960_s20 = smov 16   ;;  %vm1213_vm13 = vcmask 195584   ;;  %vm1242_vm14 = vcmask 228352   ;;  %vm1271_vm15 = vcmask 261120  }
   0xf   : > { %s1864_s13 = sshll.u32 %s3847_s9, 8  ;;  %s1961_s21 = smov 20  }
  0x10   : > { %s2004_s16 = scalar_lea.vmem %s3534_s0, %s1864_s13  ;;  %s1962_s22 = smov 28  }
  0x11   : > { %v2007_v0 = vld [vmem:[%s2004_s16 + $0x28] sm:$0xff]  ;;  %v2010_v1 = vld [vmem:[%s2004_s16 + $0x18] sm:$0xff]  ;;  %v2023_v6 = vld [vmem:[%s2004_s16 + $0x20] sm:$0xff]  ;;  %s1963_s23 = smov 24   ;;  %s1964_s24 = smov 32  }
  0x12   : > { %3610 = vst [vmem:[#allocation3_spill] sm:$0xff] %v2007_v0  ;;  %v2013_v2 = vld [vmem:[%s2004_s16 + $0x8] sm:$0xff]  ;;  %v2016_v3 = vrot.slane %v2007_v0, 1  ;;  %v2019_v4 = vrot.slane %v2010_v1, 1  ;;  %v2026_v7 = vld [vmem:[%s2004_s16 + $0x10] sm:$0xff]  ;;  %v2029_v8 = vld [vmem:[%s2004_s16] sm:$0xff] }
  0x13   : > { %3611 = vst [vmem:[#allocation4_spill] sm:$0xff] %v2013_v2  ;;  %v296_v5 = vrot.slane %v2013_v2, 1  ;;  %v301_v9 = vrot.slane %v2023_v6, 1  ;;  %v298_v10 = vrot.slane %v2026_v7, 1  ;;  %v295_v11 = vrot.slane %v2029_v8, 1  ;;  %v2049_v15 = vld [vmem:[%s2004_s16 + $0x40] sm:$0xff] }
  0x14   : > { %347 = vrot.lane.b32.xlu2 %v2016_v3, %s1957_s17  ;;  %343 = vrot.lane.b32.xlu1 %v2019_v4, %s1957_s17  ;;  %v2052_v16 = vld [vmem:[%s2004_s16 + $0x48] sm:$0xff]  ;;  %v2055_v17 = vld [vmem:[%s2004_s16 + $0x38] sm:$0xff]  ;;  %v307_v19 = vrot.slane %v2049_v15, 1  ;;  %s1880_s8 = smul.u32 200, %s3847_s9 }
  0x15   : > { %339 = vrot.lane.b32.xlu0 %v296_v5, %s1957_s17  ;;  %v2041_v12 = vsel %vm294_vm0, %v301_v9, %v2016_v3  ;;  %v2045_v13 = vsel %vm294_vm0, %v298_v10, %v2019_v4  ;;  %v297_v14 = vsel %vm294_vm0, %v295_v11, %v296_v5  ;;  %v2058_v18 = vld [vmem:[%s2004_s16 + $0x30] sm:$0xff]  ;;  %v2067_v20 = vrot.slane %v2052_v16, 1  ;;  %v2082_v25 = vld [vmem:[%s2004_s16 + $0x58] sm:$0xff]  ;;  %v2108_v32 = vld [vmem:[%s2004_s16 + $0x68] sm:$0xff] }
  0x16   : > { %v2070_v21 = vrot.slane %v2055_v17, 1  ;;  %v304_v22 = vrot.slane %v2058_v18, 1  ;;  %v2085_v26 = vld [vmem:[%s2004_s16 + $0x50] sm:$0xff]  ;;  %v2094_v27 = vrot.slane %v2082_v25, 1  ;;  %v2105_v31 = vld [vmem:[%s2004_s16 + $0x78] sm:$0xff]  ;;  %3614 = vst [vmem:[#allocation7_spill] sm:$0xff] %v2108_v32  ;;  %s3392_s13 = scalar_lea.vmem %s3536_s2, %s1880_s8 }
  0x17   : > { %v2075_v23 = vsel %vm294_vm0, %v307_v19, %v2067_v20  ;;  %v310_v28 = vrot.slane %v2085_v26, 1  ;;  %v2102_v30 = vld [vmem:[%s2004_s16 + $0x70] sm:$0xff]  ;;  %3613 = vst [vmem:[#allocation6_spill] sm:$0xff] %v2105_v31  ;;  %v2111_v33 = vld [vmem:[%s2004_s16 + $0x60] sm:$0xff]  ;;  %v2121_v35 = vrot.slane %v2105_v31, 1  ;;  %v2124_v36 = vrot.slane %v2108_v32, 1 }
  0x18   : > { %v2079_v24 = vsel %vm294_vm0, %v304_v22, %v2070_v21  ;;  %3612 = vst [vmem:[#allocation5_spill] sm:$0xff] %v2102_v30  ;;  %v316_v34 = vrot.slane %v2102_v30, 1  ;;  %v313_v37 = vrot.slane %v2111_v33, 1  ;;  %v2136_v40 = vld [vmem:[%s2004_s16 + $0x88] sm:$0xff]  ;;  %v2139_v41 = vld [vmem:[%s2004_s16 + $0x80] sm:$0xff]  ;;  %v2162_v47 = vld [vmem:[%s2004_s16 + $0x98] sm:$0xff] }
  0x19   : > { %v2099_v29 = vsel %vm294_vm0, %v310_v28, %v2094_v27  ;;  %3615 = vst [vmem:[#allocation8_spill] sm:$0xff] %v2121_v35  ;;  %v2148_v42 = vrot.slane %v2136_v40, 1  ;;  %v319_v43 = vrot.slane %v2139_v41, 1  ;;  %v2156_v45 = vld [vmem:[%s2004_s16 + $0xa0] sm:$0xff]  ;;  %v2159_v46 = vld [vmem:[%s2004_s16 + $0xa8] sm:$0xff]  ;;  %v2165_v48 = vld [vmem:[%s2004_s16 + $0x90] sm:$0xff] }
  0x1a   : > { %3616 = vst [vmem:[#allocation9_spill] sm:$0xff] %v2124_v36  ;;  %v2129_v38 = vsel %vm294_vm0, %v316_v34, %v2121_v35  ;;  %v2133_v39 = vsel %vm294_vm0, %v313_v37, %v2124_v36  ;;  %v325_v49 = vrot.slane %v2156_v45, 1  ;;  %v2175_v50 = vrot.slane %v2159_v46, 1  ;;  %v2190_v55 = vld [vmem:[%s2004_s16 + $0xb8] sm:$0xff]  ;;  %v2193_v56 = vld [vmem:[%s2004_s16 + $0xb0] sm:$0xff]  ;;  %v2216_v62 = vld [vmem:[%s2004_s16 + $0xc8] sm:$0xff] }
  0x1b   : > { %3617 = vst [vmem:[#allocation10_spill] sm:$0xff] %v2129_v38  ;;  %v2153_v44 = vsel %vm294_vm0, %v319_v43, %v2148_v42  ;;  %v2178_v51 = vrot.slane %v2162_v47, 1  ;;  %v322_v52 = vrot.slane %v2165_v48, 1  ;;  %v2202_v57 = vrot.slane %v2190_v55, 1  ;;  %v2210_v60 = vld [vmem:[%s2004_s16 + $0xd0] sm:$0xff]  ;;  %v2213_v61 = vld [vmem:[%s2004_s16 + $0xd8] sm:$0xff] }
  0x1c   : > { %345 = vrot.lane.b32.xlu2 %v2041_v12, %s1957_s17  ;;  %341 = vrot.lane.b32.xlu1 %v2045_v13, %s1957_s17  ;;  %3618 = vst [vmem:[#allocation11_spill] sm:$0xff] %v2136_v40  ;;  %v2183_v53 = vsel %vm294_vm0, %v325_v49, %v2175_v50  ;;  %v328_v58 = vrot.slane %v2193_v56, 1  ;;  %v2219_v63 = vld [vmem:[%s2004_s16 + $0xc0] sm:$0xff]  ;;  %v334_v5 = vrot.slane %v2210_v60, 1  ;;  %v2229_v9 = vrot.slane %v2213_v61, 1 }
  0x1d   : > { %337 = vrot.lane.b32.xlu0 %v297_v14, %s1957_s17  ;;  %3619 = vst [vmem:[#allocation12_spill] sm:$0xff] %v2139_v41  ;;  %v2187_v54 = vsel %vm294_vm0, %v322_v52, %v2178_v51  ;;  %v2232_v10 = vrot.slane %v2216_v62, 1  ;;  %v331_v11 = vrot.slane %v2219_v63, 1  ;;  %v423_v22 = vrot.slane %v2013_v2, 2 }
  0x1e   : > { %3620 = vst [vmem:[#allocation13_spill] sm:$0xff] %v2148_v42  ;;  %v2207_v59 = vsel %vm294_vm0, %v328_v58, %v2202_v57  ;;  %v2237_v14 = vsel %vm294_vm0, %v334_v5, %v2229_v9  ;;  %v422_v28 = vrot.slane %v2029_v8, 2  ;;  %v428_v37 = vrot.slane %v2023_v6, 2 }
  0x1f   : > { %3621 = vst [vmem:[#allocation14_spill] sm:$0xff] %v2153_v44  ;;  %v2241_v19 = vsel %vm294_vm0, %v331_v11, %v2232_v10  ;;  %v2258_v43 = vrot.slane %v2007_v0, 2  ;;  %v2261_v49 = vrot.slane %v2010_v1, 2  ;;  %v425_v8 = vrot.slane %v2026_v7, 2 }
  0x20   : > { %3622 = vst [vmem:[#allocation15_spill] sm:$0xff] %v2165_v48  ;;  %v424_v34 = vsel %vm421_vm1, %v422_v28, %v423_v22  ;;  %v2279_v5 = vrot.slane %v2055_v17, 2  ;;  %v431_v11 = vrot.slane %v2058_v18, 2  ;;  %v437_v28 = vrot.slane %v2085_v26, 2 }
  0x21   : > { %3623 = vst [vmem:[#allocation16_spill] sm:$0xff] %v2175_v50  ;;  %v2266_v52 = vsel %vm421_vm1, %v428_v37, %v2258_v43  ;;  %v2270_v58 = vsel %vm421_vm1, %v425_v8, %v2261_v49  ;;  %v2299_v8 = vrot.slane %v2052_v16, 2 }
  0x22   : > { %3624 = vst [vmem:[#allocation17_spill] sm:$0xff] %v2178_v51 }
  0x23   : > { %3625 = vst [vmem:[#allocation18_spill] sm:$0xff] %v2183_v53 }
  0x24   : > { %353 = vrot.lane.b32.xlu2 %v2075_v23, %s1957_s17  ;;  %351 = vrot.lane.b32.xlu1 %v2070_v21, %s1957_s17  ;;  %3626 = vst [vmem:[#allocation19_spill] sm:$0xff] %v2187_v54 }
  0x25   : > { %349 = vrot.lane.b32.xlu0 %v2079_v24, %s1957_s17  ;;  %3627 = vst [vmem:[#allocation20_spill] sm:$0xff] %v2202_v57 }
  0x26   : > { %3628 = vst [vmem:[#allocation21_spill] sm:$0xff] %v2207_v59 }
  0x27   : > { %3629 = vst [vmem:[#allocation22_spill] sm:$0xff] %v2213_v61 }
  0x28   : > { %3630 = vst [vmem:[#allocation23_spill] sm:$0xff] %v2229_v9 }
  0x29   : > { %3631 = vst [vmem:[#allocation24_spill] sm:$0xff] %v2232_v10 }
  0x2a   : > { %3632 = vst [vmem:[#allocation25_spill] sm:$0xff] %v2237_v14 }
  0x2b   : > { %3633 = vst [vmem:[#allocation26_spill] sm:$0xff] %v2241_v19 }
  0x2c   : > { %359 = vrot.lane.b32.xlu2 %v2094_v27, %s1957_s17  ;;  %357 = vrot.lane.b32.xlu1 %v2099_v29, %s1957_s17  ;;  %3634 = vst [vmem:[#allocation27_spill] sm:$0xff] %v2258_v43 }
  0x2d   : > { %355 = vrot.lane.b32.xlu0 %v2067_v20, %s1957_s17  ;;  %3635 = vst [vmem:[#allocation28_spill] sm:$0xff] %v2266_v52 }
  0x2e   : > { %3636 = vst [vmem:[#allocation29_spill] sm:$0xff] %v2279_v5 }
  0x2f   : > { %3639 = vst [vmem:[#allocation32_spill] sm:$0xff] %v2299_v8 }
  0x34   : > { %365 = vrot.lane.b32.xlu2 %v2129_v38, %s1957_s17  ;;  %363 = vrot.lane.b32.xlu1 %v2124_v36, %s1957_s17 }
  0x35   : > { %361 = vrot.lane.b32.xlu0 %v2133_v39, %s1957_s17 }
  0x3c   : > { %371 = vrot.lane.b32.xlu2 %v2148_v42, %s1957_s17  ;;  %369 = vrot.lane.b32.xlu1 %v2153_v44, %s1957_s17 }
  0x3d   : > { %367 = vrot.lane.b32.xlu0 %v2121_v35, %s1957_s17 }
  0x44   : > { %377 = vrot.lane.b32.xlu2 %v2183_v53, %s1957_s17  ;;  %375 = vrot.lane.b32.xlu1 %v2178_v51, %s1957_s17 }
  0x45   : > { %373 = vrot.lane.b32.xlu0 %v2187_v54, %s1957_s17 }
  0x4c   : > { %383 = vrot.lane.b32.xlu2 %v2202_v57, %s1957_s17  ;;  %381 = vrot.lane.b32.xlu1 %v2207_v59, %s1957_s17 }
  0x4d   : > { %379 = vrot.lane.b32.xlu0 %v2175_v50, %s1957_s17 }
  0x54   : > { %389 = vrot.lane.b32.xlu2 %v2237_v14, %s1957_s17  ;;  %387 = vrot.lane.b32.xlu1 %v2232_v10, %s1957_s17 }
  0x55   : > { %385 = vrot.lane.b32.xlu0 %v2241_v19, %s1957_s17 }
  0x5c   : > { %466 = vrot.lane.b32.xlu2 %v423_v22, %s1958_s18  ;;  %464 = vrot.lane.b32.xlu1 %v424_v34, %s1958_s18  ;;  %v2284_v22 = vsel %vm421_vm1, %v431_v11, %v2279_v5  ;;  %v2294_v34 = vrot.slane %v2082_v25, 2  ;;  %v434_v11 = vrot.slane %v2049_v15, 2 }
  0x5d   : > { %391 = vrot.lane.b32.xlu0 %v2229_v9, %s1957_s17 }
  0x5e   : > { %3637 = vst [vmem:[#allocation30_spill] sm:$0xff] %v2294_v34  ;;  %v2304_v2 = vsel %vm421_vm1, %v437_v28, %v2294_v34 }
  0x5f   : > { %3640 = vst [vmem:[#allocation33_spill] sm:$0xff] %v2304_v2 }
  0x64   : > { %472 = vrot.lane.b32.xlu2 %v2266_v52, %s1958_s18  ;;  %470 = vrot.lane.b32.xlu1 %v2261_v49, %s1958_s18  ;;  %v440_v52 = vrot.slane %v2111_v33, 2 }
  0x65   : > { %468 = vrot.lane.b32.xlu0 %v2270_v58, %s1958_s18 }
  0x6c   : > { %478 = vrot.lane.b32.xlu2 %v2279_v5, %s1958_s18  ;;  %476 = vrot.lane.b32.xlu1 %v2284_v22, %s1958_s18  ;;  %v2308_v5 = vsel %vm421_vm1, %v434_v11, %v2299_v8 }
  0x6d   : > { %474 = vrot.lane.b32.xlu0 %v2258_v43, %s1958_s18  ;;  %3641 = vst [vmem:[#allocation34_spill] sm:$0xff] %v2308_v5 }
  0x6e   : > { %v2296_v37 = vpop.permute.xlu2 %347 }
  0x6f   : > { %3638 = vst [vmem:[#allocation31_spill] sm:$0xff] %v2296_v37  ;;  %v2317_v37 = vrot.slane %v2108_v32, 2 }
  0x71   : > { %3642 = vst [vmem:[#allocation35_spill] sm:$0xff] %v2317_v37  ;;  %v2324_v11 = vsel %vm421_vm1, %v440_v52, %v2317_v37  ;;  %v443_v52 = vrot.slane %v2102_v30, 2 }
  0x72   : > { %3644 = vst [vmem:[#allocation37_spill] sm:$0xff] %v2324_v11 }
  0x74   : > { %484 = vrot.lane.b32.xlu2 %v2304_v2, %s1958_s18  ;;  %482 = vrot.lane.b32.xlu1 %v2299_v8, %s1958_s18  ;;  %v446_v2 = vrot.slane %v2139_v41, 2 }
  0x75   : > { %480 = vrot.lane.b32.xlu0 %v2308_v5, %s1958_s18  ;;  %v2334_v5 = vrot.slane %v2136_v40, 2 }
  0x76   : > { %v2320_v28 = vpop.permute.xlu2 %345 }
  0x77   : > { %3643 = vst [vmem:[#allocation36_spill] sm:$0xff] %v2320_v28  ;;  %v2339_v28 = vrot.slane %v2105_v31, 2 }
  0x78   : > { %3645 = vst [vmem:[#allocation38_spill] sm:$0xff] %v2334_v5 }
  0x79   : > { %3647 = vst [vmem:[#allocation40_spill] sm:$0xff] %v2339_v28 }
  0x7c   : > { %490 = vrot.lane.b32.xlu2 %v2317_v37, %s1958_s18  ;;  %488 = vrot.lane.b32.xlu1 %v2324_v11, %s1958_s18  ;;  %v2344_v37 = vsel %vm421_vm1, %v446_v2, %v2334_v5  ;;  %v2348_v11 = vsel %vm421_vm1, %v443_v52, %v2339_v28 }
  0x7d   : > { %486 = vrot.lane.b32.xlu0 %v2294_v34, %s1958_s18  ;;  %3648 = vst [vmem:[#allocation41_spill] sm:$0xff] %v2344_v37  ;;  %v449_v34 = vrot.slane %v2165_v48, 2 }
  0x7e   : > { %v2336_v8 = vpop.permute.xlu2 %353  ;;  %3649 = vst [vmem:[#allocation42_spill] sm:$0xff] %v2348_v11 }
  0x7f   : > { %3646 = vst [vmem:[#allocation39_spill] sm:$0xff] %v2336_v8  ;;  %v2357_v8 = vrot.slane %v2162_v47, 2 }
  0x81   : > { %3650 = vst [vmem:[#allocation43_spill] sm:$0xff] %v2357_v8 }
  0x84   : > { %496 = vrot.lane.b32.xlu2 %v2344_v37, %s1958_s18  ;;  %494 = vrot.lane.b32.xlu1 %v2339_v28, %s1958_s18  ;;  %v2368_v37 = vsel %vm421_vm1, %v449_v34, %v2357_v8  ;;  %v2385_v34 = vrot.slane %v2159_v46, 2 }
  0x85   : > { %492 = vrot.lane.b32.xlu0 %v2348_v11, %s1958_s18  ;;  %3654 = vst [vmem:[#allocation47_spill] sm:$0xff] %v2368_v37  ;;  %v455_v11 = vrot.slane %v2193_v56, 2 }
  0x86   : > { %v2360_v2 = vpop.permute.xlu2 %359  ;;  %v2362_v43 = vpop.permute.xlu1 %343  ;;  %3658 = vst [vmem:[#allocation51_spill] sm:$0xff] %v2385_v34 }
  0x87   : > { %3651 = vst [vmem:[#allocation44_spill] sm:$0xff] %v2360_v2  ;;  %v2364_v52 = vpop.permute.xlu0 %339  ;;  %v2378_v2 = vrot.slane %v2190_v55, 2 }
  0x88   : > { %3652 = vst [vmem:[#allocation45_spill] sm:$0xff] %v2362_v43 }
  0x89   : > { %3653 = vst [vmem:[#allocation46_spill] sm:$0xff] %v2364_v52 }
  0x8a   : > { %3655 = vst [vmem:[#allocation48_spill] sm:$0xff] %v2378_v2 }
  0x8c   : > { %502 = vrot.lane.b32.xlu2 %v2357_v8, %s1958_s18  ;;  %500 = vrot.lane.b32.xlu1 %v2368_v37, %s1958_s18  ;;  %v452_v8 = vrot.slane %v2156_v45, 2  ;;  %v2392_v37 = vsel %vm421_vm1, %v455_v11, %v2378_v2 }
  0x8d   : > { %498 = vrot.lane.b32.xlu0 %v2334_v5, %s1958_s18  ;;  %3660 = vst [vmem:[#allocation53_spill] sm:$0xff] %v2392_v37 }
  0x8e   : > { %v2380_v43 = vpop.permute.xlu2 %365  ;;  %v2382_v52 = vpop.permute.xlu1 %341  ;;  %v2396_v5 = vsel %vm421_vm1, %v452_v8, %v2385_v34 }
  0x8f   : > { %3656 = vst [vmem:[#allocation49_spill] sm:$0xff] %v2380_v43  ;;  %v2388_v28 = vpop.permute.xlu0 %337  ;;  %v2405_v43 = vrot.slane %v2216_v62, 2 }
  0x90   : > { %3657 = vst [vmem:[#allocation50_spill] sm:$0xff] %v2382_v52  ;;  %v458_v52 = vrot.slane %v2219_v63, 2 }
  0x91   : > { %3659 = vst [vmem:[#allocation52_spill] sm:$0xff] %v2388_v28 }
  0x92   : > { %3661 = vst [vmem:[#allocation54_spill] sm:$0xff] %v2396_v5 }
  0x93   : > { %3662 = vst [vmem:[#allocation55_spill] sm:$0xff] %v2405_v43 }
  0x94   : > { %508 = vrot.lane.b32.xlu2 %v2392_v37, %s1958_s18  ;;  %506 = vrot.lane.b32.xlu1 %v2385_v34, %s1958_s18  ;;  %v2416_v37 = vsel %vm421_vm1, %v458_v52, %v2405_v43 }
  0x95   : > { %504 = vrot.lane.b32.xlu0 %v2396_v5, %s1958_s18  ;;  %3665 = vst [vmem:[#allocation58_spill] sm:$0xff] %v2416_v37  ;;  %v2429_v5 = vrot.slane %v2213_v61, 2 }
  0x96   : > { %v2408_v11 = vpop.permute.xlu2 %371  ;;  %v2410_v28 = vpop.permute.xlu1 %351 }
  0x97   : > { %3663 = vst [vmem:[#allocation56_spill] sm:$0xff] %v2408_v11  ;;  %v2412_v8 = vpop.permute.xlu0 %349 }
  0x98   : > { %3664 = vst [vmem:[#allocation57_spill] sm:$0xff] %v2412_v8  ;;  %v461_v8 = vrot.slane %v2210_v60, 2 }
  0x99   : > { %3668 = vst [vmem:[#allocation61_spill] sm:$0xff] %v2429_v5 }
  0x9c   : > { %514 = vrot.lane.b32.xlu2 %v2405_v43, %s1958_s18  ;;  %512 = vrot.lane.b32.xlu1 %v2416_v37, %s1958_s18  ;;  %v2436_v43 = vsel %vm421_vm1, %v461_v8, %v2429_v5 }
  0x9d   : > { %510 = vrot.lane.b32.xlu0 %v2378_v2, %s1958_s18  ;;  %3670 = vst [vmem:[#allocation63_spill] sm:$0xff] %v2436_v43 }
  0x9e   : > { %v2424_v34 = vpop.permute.xlu2 %377  ;;  %v2426_v11 = vpop.permute.xlu1 %357 }
  0x9f   : > { %3666 = vst [vmem:[#allocation59_spill] sm:$0xff] %v2424_v34  ;;  %v2432_v52 = vpop.permute.xlu0 %355 }
  0xa0   : > { %3667 = vst [vmem:[#allocation60_spill] sm:$0xff] %v2426_v11 }
  0xa1   : > { %3669 = vst [vmem:[#allocation62_spill] sm:$0xff] %v2432_v52 }
  0xa4   : > { %550 = vrot.lane.b32.xlu2 %v2026_v7, %s1959_s19  ;;  %518 = vrot.lane.b32.xlu1 %v2429_v5, %s1958_s18 }
  0xa5   : > { %516 = vrot.lane.b32.xlu0 %v2436_v43, %s1958_s18 }
  0xa6   : > { %v2444_v34 = vpop.permute.xlu2 %383  ;;  %v2446_v37 = vpop.permute.xlu1 %363 }
  0xa7   : > { %3671 = vst [vmem:[#allocation64_spill] sm:$0xff] %v2446_v37  ;;  %v2448_v2 = vpop.permute.xlu0 %361 }
  0xa8   : > { %3672 = vst [vmem:[#allocation65_spill] sm:$0xff] %v2448_v2 }
  0xac   : > { %556 = vrot.lane.b32.xlu2 %v2007_v0, %s1959_s19  ;;  %554 = vrot.lane.b32.xlu1 %v2023_v6, %s1959_s19 }
  0xad   : > { %552 = vrot.lane.b32.xlu0 %v2010_v1, %s1959_s19 }
  0xae   : > { %v2456_v7 = vpop.permute.xlu2 %389  ;;  %v2458_v8 = vpop.permute.xlu1 %369 }
  0xaf   : > { %3673 = vst [vmem:[#allocation66_spill] sm:$0xff] %v2458_v8  ;;  %v2460_v5 = vpop.permute.xlu0 %367 }
  0xb0   : > { %3674 = vst [vmem:[#allocation67_spill] sm:$0xff] %v2460_v5 }
  0xb4   : > { %562 = vrot.lane.b32.xlu2 %v2049_v15, %s1959_s19  ;;  %560 = vrot.lane.b32.xlu1 %v2055_v17, %s1959_s19 }
  0xb5   : > { %558 = vrot.lane.b32.xlu0 %v2058_v18, %s1959_s19 }
  0xb6   : > { %v2468_v43 = vpop.permute.xlu1 %375  ;;  %v2470_v2 = vpop.permute.xlu2 %466 }
  0xb7   : > { %3675 = vst [vmem:[#allocation68_spill] sm:$0xff] %v2468_v43  ;;  %v2472_v1 = vpop.permute.xlu0 %373 }
  0xb8   : > { %3676 = vst [vmem:[#allocation69_spill] sm:$0xff] %v2472_v1 }
  0xbc   : > { %568 = vrot.lane.b32.xlu2 %v2082_v25, %s1959_s19  ;;  %566 = vrot.lane.b32.xlu1 %v2085_v26, %s1959_s19 }
  0xbd   : > { %564 = vrot.lane.b32.xlu0 %v2052_v16, %s1959_s19 }
  0xbe   : > { %v2480_v8 = vpop.permute.xlu1 %381  ;;  %v2482_v5 = vpop.permute.xlu2 %472 }
  0xbf   : > { %v2484_v52 = vpop.permute.xlu0 %379 }
  0xc4   : > { %574 = vrot.lane.b32.xlu2 %v2102_v30, %s1959_s19  ;;  %572 = vrot.lane.b32.xlu1 %v2108_v32, %s1959_s19 }
  0xc5   : > { %570 = vrot.lane.b32.xlu0 %v2111_v33, %s1959_s19 }
  0xc6   : > { %v2492_v43 = vpop.permute.xlu1 %387  ;;  %v2494_v1 = vpop.permute.xlu2 %478 }
  0xc7   : > { %v2496_v37 = vpop.permute.xlu0 %385 }
  0xcc   : > { %580 = vrot.lane.b32.xlu2 %v2136_v40, %s1959_s19  ;;  %578 = vrot.lane.b32.xlu1 %v2139_v41, %s1959_s19 }
  0xcd   : > { %576 = vrot.lane.b32.xlu0 %v2105_v31, %s1959_s19 }
  0xce   : > { %v2504_v30 = vpop.permute.xlu2 %484  ;;  %v2506_v32 = vpop.permute.xlu1 %464 }
  0xcf   : > { %3677 = vst [vmem:[#allocation70_spill] sm:$0xff] %v2506_v32  ;;  %v2508_v11 = vpop.permute.xlu0 %391 }
  0xd0   : > { %3678 = vst [vmem:[#allocation71_spill] sm:$0xff] %v2508_v11 }
  0xd4   : > { %586 = vrot.lane.b32.xlu2 %v2156_v45, %s1959_s19  ;;  %584 = vrot.lane.b32.xlu1 %v2162_v47, %s1959_s19 }
  0xd5   : > { %582 = vrot.lane.b32.xlu0 %v2165_v48, %s1959_s19 }
  0xd6   : > { %v2516_v41 = vpop.permute.xlu2 %490  ;;  %v2518_v40 = vpop.permute.xlu1 %470 }
  0xd7   : > { %3679 = vst [vmem:[#allocation72_spill] sm:$0xff] %v2516_v41  ;;  %v2520_v31 = vpop.permute.xlu0 %468  ;;  %v262_v41 = vld [vmem:[%s2004_s16 + $0xe0] sm:$0xff] }
  0xd8   : > { %3680 = vst [vmem:[#allocation73_spill] sm:$0xff] %v2518_v40 }
  0xd9   : > { %3681 = vst [vmem:[#allocation74_spill] sm:$0xff] %v2520_v31 }
  0xdc   : > { %592 = vrot.lane.b32.xlu2 %v2190_v55, %s1959_s19  ;;  %590 = vrot.lane.b32.xlu1 %v2193_v56, %s1959_s19 }
  0xdd   : > { %588 = vrot.lane.b32.xlu0 %v2159_v46, %s1959_s19 }
  0xde   : > { %v2528_v45 = vpop.permute.xlu2 %496  ;;  %v2530_v47 = vpop.permute.xlu1 %476 }
  0xdf   : > { %3682 = vst [vmem:[#allocation75_spill] sm:$0xff] %v2528_v45  ;;  %v2532_v48 = vpop.permute.xlu0 %474  ;;  %v263_v45 = vld [vmem:[%s2004_s16 + $0xe8] sm:$0xff] }
  0xe0   : > { %3683 = vst [vmem:[#allocation76_spill] sm:$0xff] %v2530_v47 }
  0xe1   : > { %3684 = vst [vmem:[#allocation77_spill] sm:$0xff] %v2532_v48 }
  0xe4   : > { %598 = vrot.lane.b32.xlu2 %v2210_v60, %s1959_s19  ;;  %596 = vrot.lane.b32.xlu1 %v2216_v62, %s1959_s19 }
  0xe5   : > { %594 = vrot.lane.b32.xlu0 %v2219_v63, %s1959_s19 }
  0xe6   : > { %v2540_v40 = vpop.permute.xlu2 %502  ;;  %v2542_v31 = vpop.permute.xlu1 %482 }
  0xe7   : > { %3685 = vst [vmem:[#allocation78_spill] sm:$0xff] %v2540_v40  ;;  %v2544_v32 = vpop.permute.xlu0 %480 }
  0xe8   : > { %3686 = vst [vmem:[#allocation79_spill] sm:$0xff] %v2542_v31 }
  0xe9   : > { %3687 = vst [vmem:[#allocation80_spill] sm:$0xff] %v2544_v32 }
  0xec   : > { %604 = vrot.lane.b32.xlu2 %v263_v45, %s1959_s19  ;;  %602 = vrot.lane.b32.xlu1 %v262_v41, %s1959_s19 }
  0xed   : > { %600 = vrot.lane.b32.xlu0 %v2213_v61, %s1959_s19 }
  0xee   : > { %v2552_v48 = vpop.permute.xlu2 %508  ;;  %v2554_v47 = vpop.permute.xlu1 %488 }
  0xef   : > { %3688 = vst [vmem:[#allocation81_spill] sm:$0xff] %v2554_v47  ;;  %v2556_v11 = vpop.permute.xlu0 %486 }
  0xf0   : > { %3689 = vst [vmem:[#allocation82_spill] sm:$0xff] %v2556_v11 }
  0xf4   : > { %641 = vrot.lane.b32.xlu2 %v2041_v12, %s1960_s20  ;;  %639 = vrot.lane.b32.xlu1 %v2019_v4, %s1960_s20 }
  0xf5   : > { %637 = vrot.lane.b32.xlu0 %v2045_v13, %s1960_s20 }
  0xf6   : > { %v2564_v40 = vpop.permute.xlu2 %514  ;;  %v2566_v32 = vpop.permute.xlu1 %494 }
  0xf7   : > { %3690 = vst [vmem:[#allocation83_spill] sm:$0xff] %v2566_v32  ;;  %v2568_v31 = vpop.permute.xlu0 %492 }
  0xf8   : > { %3691 = vst [vmem:[#allocation84_spill] sm:$0xff] %v2568_v31 }
  0xfc   : > { %647 = vrot.lane.b32.xlu2 %v2070_v21, %s1960_s20  ;;  %645 = vrot.lane.b32.xlu1 %v2079_v24, %s1960_s20 }
  0xfd   : > { %643 = vrot.lane.b32.xlu0 %v2016_v3, %s1960_s20 }
  0xfe   : > { %v2576_v11 = vpop.permute.xlu2 %550  ;;  %v2578_v4 = vpop.permute.xlu1 %500 }
  0xff   : > { %3692 = vst [vmem:[#allocation85_spill] sm:$0xff] %v2576_v11  ;;  %v2580_v13 = vpop.permute.xlu0 %498 }
 0x100   : > { %3693 = vst [vmem:[#allocation86_spill] sm:$0xff] %v2578_v4 }
 0x101   : > { %3694 = vst [vmem:[#allocation87_spill] sm:$0xff] %v2580_v13 }
 0x104   : > { %653 = vrot.lane.b32.xlu2 %v2099_v29, %s1960_s20  ;;  %651 = vrot.lane.b32.xlu1 %v2067_v20, %s1960_s20 }
 0x105   : > { %649 = vrot.lane.b32.xlu0 %v2075_v23, %s1960_s20 }
 0x106   : > { %v2588_v31 = vpop.permute.xlu2 %556  ;;  %v2590_v32 = vpop.permute.xlu1 %506 }
 0x107   : > { %3695 = vst [vmem:[#allocation88_spill] sm:$0xff] %v2588_v31  ;;  %v2592_v47 = vpop.permute.xlu0 %504 }
 0x108   : > { %3696 = vst [vmem:[#allocation89_spill] sm:$0xff] %v2592_v47 }
 0x10c   : > { %659 = vrot.lane.b32.xlu2 %v2124_v36, %s1960_s20  ;;  %657 = vrot.lane.b32.xlu1 %v2133_v39, %s1960_s20 }
 0x10d   : > { %655 = vrot.lane.b32.xlu0 %v2094_v27, %s1960_s20 }
 0x10e   : > { %v2600_v4 = vpop.permute.xlu2 %562  ;;  %v2602_v13 = vpop.permute.xlu1 %512 }
 0x10f   : > { %3697 = vst [vmem:[#allocation90_spill] sm:$0xff] %v2600_v4  ;;  %v2604_v11 = vpop.permute.xlu0 %510 }
 0x114   : > { %665 = vrot.lane.b32.xlu2 %v2153_v44, %s1960_s20  ;;  %663 = vrot.lane.b32.xlu1 %v2121_v35, %s1960_s20 }
 0x115   : > { %661 = vrot.lane.b32.xlu0 %v2129_v38, %s1960_s20 }
 0x116   : > { %v2612_v47 = vpop.permute.xlu2 %568  ;;  %v2614_v31 = vpop.permute.xlu1 %518 }
 0x117   : > { %3698 = vst [vmem:[#allocation91_spill] sm:$0xff] %v2612_v47  ;;  %v2616_v61 = vpop.permute.xlu0 %516 }
 0x118   : > { %3699 = vst [vmem:[#allocation92_spill] sm:$0xff] %v2614_v31 }
 0x11c   : > { %671 = vrot.lane.b32.xlu2 %v2178_v51, %s1960_s20  ;;  %669 = vrot.lane.b32.xlu1 %v2187_v54, %s1960_s20 }
 0x11d   : > { %667 = vrot.lane.b32.xlu0 %v2148_v42, %s1960_s20 }
 0x11e   : > { %v2624_v44 = vpop.permute.xlu2 %574  ;;  %v2626_v4 = vpop.permute.xlu1 %554 }
 0x11f   : > { %3700 = vst [vmem:[#allocation93_spill] sm:$0xff] %v2624_v44  ;;  %v2628_v35 = vpop.permute.xlu0 %552 }
 0x120   : > { %3701 = vst [vmem:[#allocation94_spill] sm:$0xff] %v2626_v4 }
 0x124   : > { %677 = vrot.lane.b32.xlu2 %v2207_v59, %s1960_s20  ;;  %675 = vrot.lane.b32.xlu1 %v2175_v50, %s1960_s20  ;;  %v634_v59 = vrot.slane %v262_v41, 1  ;;  %v2648_v50 = vrot.slane %v263_v45, 1 }
 0x125   : > { %673 = vrot.lane.b32.xlu0 %v2183_v53, %s1960_s20 }
 0x126   : > { %v2636_v51 = vpop.permute.xlu2 %580  ;;  %v2638_v54 = vpop.permute.xlu1 %560  ;;  %3704 = vst [vmem:[#allocation97_spill] sm:$0xff] %v2648_v50  ;;  %v2658_v44 = vsel %vm294_vm0, %v634_v59, %v2648_v50 }
 0x127   : > { %3702 = vst [vmem:[#allocation95_spill] sm:$0xff] %v2636_v51  ;;  %v2640_v42 = vpop.permute.xlu0 %558 }
 0x128   : > { %3703 = vst [vmem:[#allocation96_spill] sm:$0xff] %v2638_v54  ;;  %v3723_v54 = vld [vmem:[#allocation37_spill] sm:$0xff] }
 0x129   : > { %3707 = vst [vmem:[#allocation100_spill] sm:$0xff] %v2658_v44 }
 0x12c   : > { %683 = vrot.lane.b32.xlu2 %v2232_v10, %s1960_s20  ;;  %681 = vrot.lane.b32.xlu1 %v2241_v19, %s1960_s20  ;;  %v3719_v19 = vld [vmem:[#allocation29_spill] sm:$0xff] }
 0x12d   : > { %679 = vrot.lane.b32.xlu0 %v2202_v57, %s1960_s20  ;;  %v3717_v57 = vld [vmem:[#allocation32_spill] sm:$0xff] }
 0x12e   : > { %v2650_v4 = vpop.permute.xlu2 %586  ;;  %v2652_v53 = vpop.permute.xlu1 %566 }
 0x12f   : > { %3705 = vst [vmem:[#allocation98_spill] sm:$0xff] %v2650_v4  ;;  %v2654_v51 = vpop.permute.xlu0 %564 }
 0x130   : > { %3706 = vst [vmem:[#allocation99_spill] sm:$0xff] %v2652_v53 }
 0x134   : > { %689 = vrot.lane.b32.xlu2 %v2658_v44, %s1960_s20  ;;  %687 = vrot.lane.b32.xlu1 %v2229_v9, %s1960_s20 }
 0x135   : > { %685 = vrot.lane.b32.xlu0 %v2237_v14, %s1960_s20  ;;  %v3712_v14 = vld [vmem:[#allocation27_spill] sm:$0xff] }
 0x136   : > { %v2666_v41 = vpop.permute.xlu2 %592  ;;  %v2668_v45 = vpop.permute.xlu1 %572 }
 0x137   : > { %3708 = vst [vmem:[#allocation101_spill] sm:$0xff] %v2668_v45  ;;  %v2670_v4 = vpop.permute.xlu0 %570 }
 0x138   : > { %3709 = vst [vmem:[#allocation102_spill] sm:$0xff] %v2670_v4 }
 0x13c   : > { %726 = vrot.lane.b32.xlu2 %v2261_v49, %s1961_s21  ;;  %724 = vrot.lane.b32.xlu1 %v2270_v58, %s1961_s21  ;;  %v3713_v49 = vld [vmem:[#allocation28_spill] sm:$0xff] }
 0x13d   : > { %691 = vrot.lane.b32.xlu0 %v2648_v50, %s1960_s20 }
 0x13e   : > { %v2678_v59 = vpop.permute.xlu2 %598  ;;  %v2680_v44 = vpop.permute.xlu1 %578 }
 0x13f   : > { %3710 = vst [vmem:[#allocation103_spill] sm:$0xff] %v2680_v44  ;;  %v2682_v9 = vpop.permute.xlu0 %576  ;;  %v3718_v44 = vld [vmem:[#allocation34_spill] sm:$0xff] }
 0x140   : > { %3711 = vst [vmem:[#allocation104_spill] sm:$0xff] %v2682_v9 }
 0x144   : > { %732 = vrot.lane.b32.xlu2 %v2284_v22, %s1961_s21  ;;  %730 = vrot.lane.b32.xlu1 %v3712_v14, %s1961_s21 }
 0x145   : > { %728 = vrot.lane.b32.xlu0 %v3713_v49, %s1961_s21 }
 0x146   : > { %v2690_v10 = vpop.permute.xlu2 %604  ;;  %v2692_v58 = vpop.permute.xlu1 %584 }
 0x147   : > { %3714 = vst [vmem:[#allocation27_spill] sm:$0xff] %v2690_v10  ;;  %v2694_v50 = vpop.permute.xlu0 %582 }
 0x148   : > { %3715 = vst [vmem:[#allocation28_spill] sm:$0xff] %v2692_v58  ;;  %v3725_v58 = vld [vmem:[#allocation33_spill] sm:$0xff] }
 0x149   : > { %3716 = vst [vmem:[#allocation105_spill] sm:$0xff] %v2694_v50  ;;  %v3724_v50 = vld [vmem:[#allocation30_spill] sm:$0xff] }
 0x14c   : > { %738 = vrot.lane.b32.xlu2 %v3717_v57, %s1961_s21  ;;  %736 = vrot.lane.b32.xlu1 %v3718_v44, %s1961_s21 }
 0x14d   : > { %734 = vrot.lane.b32.xlu0 %v3719_v19, %s1961_s21 }
 0x14e   : > { %v2702_v45 = vpop.permute.xlu2 %641  ;;  %v2704_v53 = vpop.permute.xlu1 %590 }
 0x14f   : > { %3720 = vst [vmem:[#allocation32_spill] sm:$0xff] %v2702_v45  ;;  %v2706_v47 = vpop.permute.xlu0 %588  ;;  %v3727_v45 = vld [vmem:[#allocation40_spill] sm:$0xff] }
 0x150   : > { %3721 = vst [vmem:[#allocation34_spill] sm:$0xff] %v2704_v53  ;;  %v3728_v53 = vld [vmem:[#allocation42_spill] sm:$0xff] }
 0x151   : > { %3722 = vst [vmem:[#allocation29_spill] sm:$0xff] %v2706_v47  ;;  %v3729_v47 = vld [vmem:[#allocation35_spill] sm:$0xff] }
 0x154   : > { %744 = vrot.lane.b32.xlu2 %v3723_v54, %s1961_s21  ;;  %742 = vrot.lane.b32.xlu1 %v3724_v50, %s1961_s21 }
 0x155   : > { %740 = vrot.lane.b32.xlu0 %v3725_v58, %s1961_s21 }
 0x156   : > { %v2714_v38 = vpop.permute.xlu2 %647  ;;  %v597_v9 = vpop.permute.xlu1 %596 }
 0x157   : > { %3726 = vst [vmem:[#allocation37_spill] sm:$0xff] %v2714_v38  ;;  %v2716_v10 = vpop.permute.xlu0 %594 }
 0x15c   : > { %750 = vrot.lane.b32.xlu2 %v3727_v45, %s1961_s21  ;;  %748 = vrot.lane.b32.xlu1 %v3728_v53, %s1961_s21 }
 0x15d   : > { %746 = vrot.lane.b32.xlu0 %v3729_v47, %s1961_s21 }
 0x15e   : > { %v2724_v31 = vpop.permute.xlu2 %653  ;;  %v603_v4 = vpop.permute.xlu1 %602 }
 0x15f   : > { %3730 = vst [vmem:[#allocation30_spill] sm:$0xff] %v2724_v31  ;;  %v2726_v36 = vpop.permute.xlu0 %600 }
 0x164   : > { %897 = vrot.lane.b32.xlu2 %v2041_v12, %s1962_s22  ;;  %812 = vrot.lane.b32.xlu1 %v2007_v0, %s1963_s23 }
 0x165   : > { %810 = vrot.lane.b32.xlu0 %v2023_v6, %s1963_s23 }
 0x166   : > { %v2734_v38 = vpop.permute.xlu2 %659  ;;  %v640_v53 = vpop.permute.xlu1 %639 }
 0x167   : > { %3731 = vst [vmem:[#allocation33_spill] sm:$0xff] %v2734_v38  ;;  %v2736_v45 = vpop.permute.xlu0 %637 }
 0x168   : > { %3732 = vst [vmem:[#allocation35_spill] sm:$0xff] %v2736_v45 }
 0x16c   : > { %984 = vrot.lane.b32.xlu2 %v3713_v49, %s1964_s24  ;;  %814 = vrot.lane.b32.xlu1 %v2058_v18, %s1963_s23 }
 0x16d   : > { %899 = vrot.lane.b32.xlu0 %v2016_v3, %s1962_s22 }
 0x16e   : > { %v2744_v12 = vpop.permute.xlu2 %665  ;;  %v646_v31 = vpop.permute.xlu1 %645 }
 0x16f   : > { %3733 = vst [vmem:[#allocation106_spill] sm:$0xff] %v2744_v12  ;;  %v2746_v0 = vpop.permute.xlu0 %643 }
 0x174   : > { %988 = vrot.lane.b32.xlu2 %v2284_v22, %s1964_s24  ;;  %901 = vrot.lane.b32.xlu1 %v2079_v24, %s1962_s22  ;;  %v1092_v22 = vsel %vm1068_vm2, %v2190_v55, %v2444_v34 }
 0x175   : > { %986 = vrot.lane.b32.xlu0 %v3712_v14, %s1964_s24 }
 0x176   : > { %v2754_v49 = vpop.permute.xlu2 %671  ;;  %v2756_v45 = vpop.permute.xlu1 %651 }
 0x177   : > { %3734 = vst [vmem:[#allocation107_spill] sm:$0xff] %v2754_v49  ;;  %v2758_v38 = vpop.permute.xlu0 %649 }
 0x17c   : > { %903 = vrot.lane.b32.xlu2 %v2070_v21, %s1962_s22  ;;  %818 = vrot.lane.b32.xlu1 %v2049_v15, %s1963_s23  ;;  %v1121_v21 = vsel %vm1097_vm3, %v1092_v22, %v2604_v11 }
 0x17d   : > { %816 = vrot.lane.b32.xlu0 %v2055_v17, %s1963_s23 }
 0x17e   : > { %v2766_v3 = vpop.permute.xlu2 %677  ;;  %v2768_v24 = vpop.permute.xlu1 %657 }
 0x17f   : > { %3735 = vst [vmem:[#allocation108_spill] sm:$0xff] %v2766_v3  ;;  %v2770_v14 = vpop.permute.xlu0 %655  ;;  %v1150_v3 = vsel %vm1126_vm4, %v1121_v21, %v597_v9 }
 0x184   : > { %992 = vrot.lane.b32.xlu2 %v3718_v44, %s1964_s24  ;;  %990 = vrot.lane.b32.xlu1 %v3719_v19, %s1964_s24  ;;  %v1095_v19 = vsel %vm1068_vm2, %v2210_v60, %v2456_v7  ;;  %v3737_v7 = vld [vmem:[#allocation4_spill] sm:$0xff] }
 0x185   : > { %905 = vrot.lane.b32.xlu0 %v2075_v23, %s1962_s22  ;;  %v1124_v23 = vsel %vm1097_vm3, %v1095_v19, %v2616_v61 }
 0x186   : > { %v684_v49 = vpop.permute.xlu2 %683  ;;  %v2784_v12 = vpop.permute.xlu1 %663  ;;  %v1153_v9 = vsel %vm1126_vm4, %v1124_v23, %v603_v4 }
 0x187   : > { %v2787_v55 = vsel %vm1155_vm5, %v1150_v3, %v684_v49  ;;  %v2789_v44 = vpop.permute.xlu0 %661 }
 0x18c   : > { %907 = vrot.lane.b32.xlu2 %v2067_v20, %s1962_s22  ;;  %822 = vrot.lane.b32.xlu1 %v2085_v26, %s1963_s23  ;;  %v3736_v20 = vld [vmem:[#allocation46_spill] sm:$0xff] }
 0x18d   : > { %820 = vrot.lane.b32.xlu0 %v2052_v16, %s1963_s23  ;;  %v1070_v3 = vsel %vm1068_vm2, %v3737_v7, %v3736_v20  ;;  %v3740_v20 = vld [vmem:[#allocation9_spill] sm:$0xff]  ;;  %v3742_v7 = vld [vmem:[#allocation71_spill] sm:$0xff] }
 0x18e   : > { %v690_v34 = vpop.permute.xlu2 %689  ;;  %v2803_v11 = vpop.permute.xlu1 %669  ;;  %v1099_v61 = vsel %vm1097_vm3, %v1070_v3, %v2470_v2  ;;  %v3743_v3 = vld [vmem:[#allocation22_spill] sm:$0xff] }
 0x18f   : > { %v2806_v49 = vsel %vm1155_vm5, %v1153_v9, %v690_v34  ;;  %v2808_v60 = vpop.permute.xlu0 %667  ;;  %v1128_v4 = vsel %vm1126_vm4, %v1099_v61, %v2628_v35  ;;  %v1091_v35 = vsel %vm1068_vm2, %v2193_v56, %v2480_v8  ;;  %v1096_v61 = vsel %vm1068_vm2, %v3743_v3, %v3742_v7  ;;  %v3760_v3 = vld [vmem:[#allocation90_spill] sm:$0xff] }
 0x190   : > { %v1157_v22 = vsel %vm1155_vm5, %v1128_v4, %v640_v53  ;;  %v1090_v53 = vsel %vm1068_vm2, %v2159_v46, %v2484_v52  ;;  %v3744_v4 = vld [vmem:[#allocation102_spill] sm:$0xff] }
 0x191   : > { %v1119_v56 = vsel %vm1097_vm3, %v1090_v53, %v2590_v32  ;;  %v1076_v32 = vsel %vm1068_vm2, %v2055_v17, %v2410_v28 }
 0x192   : > { %v1148_v46 = vsel %vm1126_vm4, %v1119_v56, %v2666_v41  ;;  %v1093_v41 = vsel %vm1068_vm2, %v2219_v63, %v2496_v37 }
 0x194   : > { %996 = vrot.lane.b32.xlu2 %v3725_v58, %s1964_s24  ;;  %994 = vrot.lane.b32.xlu1 %v3717_v57, %s1964_s24  ;;  %v3738_v58 = vld [vmem:[#allocation36_spill] sm:$0xff] }
 0x195   : > { %909 = vrot.lane.b32.xlu0 %v2099_v29, %s1962_s22  ;;  %v1073_v57 = vsel %vm1068_vm2, %v2023_v6, %v3738_v58  ;;  %v1120_v6 = vsel %vm1097_vm3, %v1091_v35, %v2552_v48 }
 0x196   : > { %v727_v21 = vpop.permute.xlu2 %726  ;;  %v2824_v19 = vpop.permute.xlu1 %675  ;;  %v1102_v29 = vsel %vm1097_vm3, %v1073_v57, %v2482_v5 }
 0x197   : > { %v2827_v2 = vsel %vm1184_vm6, %v1157_v22, %v727_v21  ;;  %v2829_v23 = vpop.permute.xlu0 %673  ;;  %v1131_v9 = vsel %vm1126_vm4, %v1102_v29, %v2640_v42  ;;  %v3745_v21 = vld [vmem:[#allocation7_spill] sm:$0xff] }
 0x198   : > { %v1160_v5 = vsel %vm1155_vm5, %v1131_v9, %v646_v31  ;;  %v1094_v31 = vsel %vm1068_vm2, %v2216_v62, %v2492_v43  ;;  %v1122_v62 = vsel %vm1097_vm3, %v1093_v41, %v2602_v13  ;;  %v3739_v13 = vld [vmem:[#allocation60_spill] sm:$0xff]  ;;  %v3747_v29 = vld [vmem:[#allocation27_spill] sm:$0xff]  ;;  %v3752_v41 = vld [vmem:[#allocation10_spill] sm:$0xff] }
 0x199   : > { %v1123_v17 = vsel %vm1097_vm3, %v1094_v31, %v2564_v40  ;;  %v1151_v40 = vsel %vm1126_vm4, %v1122_v62, %v2678_v59  ;;  %v3741_v59 = vld [vmem:[#allocation5_spill] sm:$0xff]  ;;  %v3751_v31 = vld [vmem:[#allocation104_spill] sm:$0xff] }
 0x19c   : > { %911 = vrot.lane.b32.xlu2 %v2094_v27, %s1962_s22  ;;  %826 = vrot.lane.b32.xlu1 %v2111_v33, %s1963_s23  ;;  %v1149_v27 = vsel %vm1126_vm4, %v1120_v6, %v2716_v10  ;;  %v1105_v10 = vsel %vm1097_vm3, %v1076_v32, %v2494_v1  ;;  %v1835_v32 = vld [vmem:[%s3535_s1 + $0x70] sm:$0xf] }
 0x19d   : > { %824 = vrot.lane.b32.xlu0 %v2082_v25, %s1963_s23  ;;  %v1134_v28 = vsel %vm1126_vm4, %v1105_v10, %v2654_v51 }
 0x19e   : > { %v733_v8 = vpop.permute.xlu2 %732  ;;  %v682_v34 = vpop.permute.xlu1 %681 }
 0x19f   : > { %v2860_v48 = vsel %vm1184_vm6, %v1160_v5, %v733_v8  ;;  %v2863_v42 = vsel %vm1155_vm5, %v1149_v27, %v682_v34  ;;  %v680_v25 = vpop.permute.xlu0 %679  ;;  %v3748_v27 = vld [vmem:[#allocation64_spill] sm:$0xff] }
 0x1a0   : > { %v2866_v52 = vsel %vm1155_vm5, %v1148_v46, %v680_v25  ;;  %v1082_v5 = vsel %vm1068_vm2, %v3745_v21, %v3748_v27  ;;  %v3749_v8 = vld [vmem:[#allocation72_spill] sm:$0xff]  ;;  %v3750_v46 = vld [vmem:[#allocation6_spill] sm:$0xff] }
 0x1a1   : > { %v1111_v34 = vsel %vm1097_vm3, %v1082_v5, %v3749_v8  ;;  %v1830_v25 = vld [vmem:[%s3535_s1 + $0x48] sm:$0xf]  ;;  %v204_v8 = vld [vmem:[%s3535_s1 + $0x10] sm:$0xff] }
 0x1a2   : > { %v1140_v10 = vsel %vm1126_vm4, %v1111_v34, %v3751_v31  ;;  %vm209_vm10 = vcmp.gt.f32.partialorder %v204_v8, 0.5  ;;  %v203_v31 = vld [vmem:[%s3535_s1 + $0x8] sm:$0xff] }
 0x1a3   : > { %vm208_vm11 = vcmp.gt.f32.partialorder %v203_v31, 0.5  ;;  %v3778_v31 = vld [vmem:[#allocation41_spill] sm:$0xff] }
 0x1a4   : > { %1000 = vrot.lane.b32.xlu2 %v3723_v54, %s1964_s24  ;;  %998 = vrot.lane.b32.xlu1 %v3724_v50, %s1964_s24  ;;  %v1152_v54 = vsel %vm1126_vm4, %v1123_v17, %v2726_v36  ;;  %v1163_v50 = vsel %vm1155_vm5, %v1134_v28, %v2756_v45  ;;  %v1079_v36 = vsel %vm1068_vm2, %v2085_v26, %v3739_v13  ;;  %v3746_v26 = vld [vmem:[#allocation92_spill] sm:$0xff] }
 0x1a5   : > { %913 = vrot.lane.b32.xlu0 %v2133_v39, %s1962_s22  ;;  %v1108_v45 = vsel %vm1097_vm3, %v1079_v36, %v2504_v30  ;;  %v1125_v58 = vsel %vm1097_vm3, %v1096_v61, %v3746_v26  ;;  %v3756_v36 = vld [vmem:[#allocation76_spill] sm:$0xff] }
 0x1a6   : > { %v739_v43 = vpop.permute.xlu2 %738  ;;  %v688_v63 = vpop.permute.xlu1 %687  ;;  %v1137_v22 = vsel %vm1126_vm4, %v1108_v45, %v3744_v4  ;;  %v1154_v53 = vsel %vm1126_vm4, %v1125_v58, %v3747_v29  ;;  %v3757_v45 = vld [vmem:[#allocation40_spill] sm:$0xff]  ;;  %v1829_v29 = vld [vmem:[%s3535_s1 + $0x40] sm:$0xff] }
 0x1a7   : > { %v2898_v37 = vsel %vm1184_vm6, %v1163_v50, %v739_v43  ;;  %v2901_v51 = vsel %vm1155_vm5, %v1152_v54, %v688_v63  ;;  %v686_v39 = vpop.permute.xlu0 %685  ;;  %v1166_v30 = vsel %vm1155_vm5, %v1137_v22, %v2768_v24  ;;  %v206_v24 = vld [vmem:[%s3535_s1 + $0x20] sm:$0xf]  ;;  %v205_v22 = vld [vmem:[%s3535_s1 + $0x18] sm:$0xff] }
 0x1a8   : > { %v2904_v1 = vsel %vm1155_vm5, %v1151_v40, %v686_v39  ;;  %vm211_vm7 = vcmp.gt.f32.partialorder %v206_v24, 0.5  ;;  %v3753_v43 = vld [vmem:[#allocation57_spill] sm:$0xff]  ;;  %v3754_v40 = vld [vmem:[#allocation31_spill] sm:$0xff]  ;;  %vm210_vm9 = vcmp.gt.f32.partialorder %v205_v22, 0.5 }
 0x1a9   : > { %v228_v17 = vsel %vm211_vm7, %v1830_v25, %v1835_v32  ;;  %v1075_v63 = vsel %vm1068_vm2, %v2058_v18, %v3753_v43  ;;  %v3755_v39 = vld [vmem:[#allocation3_spill] sm:$0xff]  ;;  %v3761_v18 = vld [vmem:[#allocation42_spill] sm:$0xff]  ;;  %v1833_v25 = vld [vmem:[%s3535_s1 + $0x60] sm:$0xff]  ;;  %vm1533_vm7 = vcmask 293888  }
 0x1aa   : > { %233 = vst [vmem:[#allocation2 + $0x18] sm:$0xf] %v228_v17  ;;  %v1074_v13 = vsel %vm1068_vm2, %v3755_v39, %v3754_v40  ;;  %v3764_v17 = vld [vmem:[#allocation62_spill] sm:$0xff]  ;;  %v202_v43 = vld [vmem:[%s3535_s1] sm:$0xff]  ;;  %v3766_v39 = vld [vmem:[#allocation79_spill] sm:$0xff] }
 0x1ab   : > { %vm207_vm12 = vcmp.gt.f32.partialorder %v202_v43, 0.5 }
 0x1ac   : > { %915 = vrot.lane.b32.xlu2 %v3740_v20, %s1962_s22  ;;  %830 = vrot.lane.b32.xlu1 %v3741_v59, %s1963_s23  ;;  %v3758_v20 = vld [vmem:[#allocation8_spill] sm:$0xff]  ;;  %v3759_v59 = vld [vmem:[#allocation77_spill] sm:$0xff] }
 0x1ad   : > { %828 = vrot.lane.b32.xlu0 %v3745_v21, %s1963_s23  ;;  %v1103_v7 = vsel %vm1097_vm3, %v1074_v13, %v3759_v59  ;;  %v3762_v21 = vld [vmem:[#allocation96_spill] sm:$0xff]  ;;  %v3770_v59 = vld [vmem:[#allocation91_spill] sm:$0xff] }
 0x1ae   : > { %v745_v57 = vpop.permute.xlu2 %744  ;;  %v2926_v35 = vpop.permute.xlu1 %724  ;;  %v1132_v26 = vsel %vm1126_vm4, %v1103_v7, %v3762_v21 }
 0x1af   : > { %v2931_v6 = vsel %vm1184_vm6, %v1166_v30, %v745_v57  ;;  %v692_v9 = vpop.permute.xlu0 %691 }
 0x1b0   : > { %v2934_v56 = vsel %vm1155_vm5, %v1154_v53, %v692_v9  ;;  %v1834_v53 = vld [vmem:[%s3535_s1 + $0x68] sm:$0xff]  ;;  %v3763_v9 = vld [vmem:[#allocation37_spill] sm:$0xff] }
 0x1b1   : > { %v1402_v4 = vld [vmem:[#allocation2 + $0x18] sm:$0xf]  ;;  %v1161_v27 = vsel %vm1155_vm5, %v1132_v26, %v3763_v9  ;;  %v227_v24 = vsel %vm210_vm9, %v1829_v29, %v1834_v53 }
 0x1b2   : > { %1836 = vmatpush.msk.msra.mxu0 %vm1584_vm8, %v1402_v4  ;;  %1865 = vmatpush.msk.msra.mxu1 %vm1584_vm8, %v1402_v4 }
 0x1b3   : > { %1866 = vmatpush.msk.msra.mxu2 %vm1584_vm8, %v1402_v4  ;;  %1867 = vmatpush.msk.msra.mxu3 %vm1584_vm8, %v1402_v4 }
 0x1b4   : > { %1002 = vrot.lane.b32.xlu2 %v3729_v47, %s1964_s24  ;;  %832 = vrot.lane.b32.xlu1 %v3750_v46, %s1963_s23  ;;  %v1169_v47 = vsel %vm1155_vm5, %v1140_v10, %v2784_v12  ;;  %v1104_v12 = vsel %vm1097_vm3, %v1075_v63, %v3756_v36  ;;  %v1828_v46 = vld [vmem:[%s3535_s1 + $0x38] sm:$0xff]  ;;  %v1827_v10 = vld [vmem:[%s3535_s1 + $0x30] sm:$0xff]  ;;  %v3767_v36 = vld [vmem:[#allocation14_spill] sm:$0xff] }
 0x1b5   : > { %917 = vrot.lane.b32.xlu0 %v3752_v41, %s1962_s22  ;;  %v1133_v61 = vsel %vm1126_vm4, %v1104_v12, %v3760_v3  ;;  %1600 = vmatpush.msra.mxu0 %v227_v24  ;;  %v226_v32 = vsel %vm209_vm10, %v1828_v46, %v1833_v25  ;;  %v1832_v41 = vld [vmem:[%s3535_s1 + $0x58] sm:$0xff]  ;;  %v3765_v63 = vld [vmem:[#allocation39_spill] sm:$0xff]  ;;  %v3776_v46 = vld [vmem:[#allocation81_spill] sm:$0xff] }
 0x1b6   : > { %v751_v28 = vpop.permute.xlu2 %750  ;;  %v2960_v62 = vpop.permute.xlu1 %730  ;;  %v1162_v58 = vsel %vm1155_vm5, %v1133_v61, %v2758_v38  ;;  %1868 = vmatpush.msra.mxu1 %v227_v24  ;;  %1869 = vmatpush.msra.mxu2 %v227_v24  ;;  %v1077_v40 = vsel %vm1068_vm2, %v2049_v15, %v3765_v63  ;;  %v3768_v12 = vld [vmem:[#allocation11_spill] sm:$0xff]  ;;  %v3771_v3 = vld [vmem:[#allocation12_spill] sm:$0xff] }
 0x1b7   : > { %v2963_v54 = vsel %vm1184_vm6, %v1169_v47, %v751_v28  ;;  %v2965_v50 = vpop.permute.xlu0 %728  ;;  %1870 = vmatpush.msra.mxu3 %v227_v24  ;;  %1601 = vmatpush.msra.mxu0 %v226_v32  ;;  %v1078_v47 = vsel %vm1068_vm2, %v2052_v16, %v3764_v17  ;;  %v225_v28 = vsel %vm208_vm11, %v1827_v10, %v1832_v41  ;;  %v1826_v16 = vld [vmem:[%s3535_s1 + $0x28] sm:$0xff]  ;;  %v3775_v24 = vld [vmem:[#allocation44_spill] sm:$0xff]  ;;  %v3780_v17 = vld [vmem:[#allocation93_spill] sm:$0xff] }
 0x1b8   : > { %1871 = vmatpush.msra.mxu1 %v226_v32  ;;  %1872 = vmatpush.msra.mxu2 %v226_v32  ;;  %v1107_v13 = vsel %vm1097_vm3, %v1078_v47, %v3766_v39  ;;  %v3779_v10 = vld [vmem:[#allocation82_spill] sm:$0xff]  ;;  %v3781_v47 = vld [vmem:[#allocation13_spill] sm:$0xff] }
 0x1b9   : > { %1873 = vmatpush.msra.mxu3 %v226_v32  ;;  %v1136_v7 = vsel %vm1126_vm4, %v1107_v13, %v3770_v59  ;;  %1602 = vmatpush.msra.mxu0 %v225_v28  ;;  %v3777_v32 = vld [vmem:[#allocation38_spill] sm:$0xff]  ;;  %v3783_v13 = vld [vmem:[#allocation33_spill] sm:$0xff] }
 0x1ba   : > { %v1165_v22 = vsel %vm1155_vm5, %v1136_v7, %v2770_v14  ;;  %1874 = vmatpush.msra.mxu1 %v225_v28  ;;  %1875 = vmatpush.msra.mxu2 %v225_v28  ;;  %v3774_v14 = vld [vmem:[#allocation65_spill] sm:$0xff]  ;;  %v3785_v7 = vld [vmem:[#allocation70_spill] sm:$0xff] }
 0x1bb   : > { %1876 = vmatpush.msra.mxu3 %v225_v28  ;;  %v3782_v28 = vld [vmem:[#allocation101_spill] sm:$0xff] }
 0x1bc   : > { %1006 = vrot.lane.b32.xlu2 %v3757_v45, %s1964_s24  ;;  %919 = vrot.lane.b32.xlu1 %v3758_v20, %s1962_s22  ;;  %v1831_v45 = vld [vmem:[%s3535_s1 + $0x50] sm:$0xff]  ;;  %v3769_v20 = vld [vmem:[#allocation80_spill] sm:$0xff] }
 0x1bd   : > { %1004 = vrot.lane.b32.xlu0 %v3761_v18, %s1964_s24  ;;  %v1106_v15 = vsel %vm1097_vm3, %v1077_v40, %v3769_v20  ;;  %v224_v61 = vsel %vm207_vm12, %v1826_v16, %v1831_v45  ;;  %v3772_v18 = vld [vmem:[#allocation99_spill] sm:$0xff]  ;;  %v1914_v20 = vld [vmem:[%s2004_s16] sm:$0xff] }
 0x1be   : > { %v2992_v30 = vpop.permute.xlu2 %897  ;;  %v737_v57 = vpop.permute.xlu1 %736  ;;  %v1135_v4 = vsel %vm1126_vm4, %v1106_v15, %v3772_v18  ;;  %1603 = vmatpush.msra.mxu0 %v224_v61  ;;  %1877 = vmatpush.msra.mxu1 %v224_v61  ;;  %v3784_v15 = vld [vmem:[#allocation52_spill] sm:$0xff] }
 0x1bf   : > { %v3005_v38 = vsel %vm1184_vm6, %v1162_v58, %v737_v57  ;;  %v735_v5 = vpop.permute.xlu0 %734  ;;  %v3773_v58 = vld [vmem:[#allocation30_spill] sm:$0xff]  ;;  %1878 = vmatpush.msra.mxu2 %v224_v61  ;;  %1879 = vmatpush.msra.mxu3 %v224_v61  ;;  %v1069_v59 = vsel %vm1068_vm2, %v1914_v20, %v3784_v15  ;;  %v3787_v61 = vld [vmem:[#allocation85_spill] sm:$0xff] }
 0x1c0   : > { %v3013_v34 = vsel %vm1184_vm6, %v1161_v27, %v735_v5  ;;  %v1164_v57 = vsel %vm1155_vm5, %v1135_v4, %v3773_v58  ;;  %v1081_v27 = vsel %vm1068_vm2, %v2111_v33, %v3774_v14  ;;  %v1913_v5 = vld [vmem:[%s2004_s16 + $0x58] sm:$0xff]  ;;  %v3788_v4 = vld [vmem:[#allocation35_spill] sm:$0xff] }
 0x1c1   : > { %v1080_v8 = vsel %vm1068_vm2, %v1913_v5, %v3775_v24  ;;  %v1110_v25 = vsel %vm1097_vm3, %v1081_v27, %v3776_v46 }
 0x1c2   : > { %v1109_v41 = vsel %vm1097_vm3, %v1080_v8, %v3779_v10  ;;  %v1139_v33 = vsel %vm1126_vm4, %v1110_v25, %v3780_v17  ;;  %v3789_v25 = vld [vmem:[#allocation17_spill] sm:$0xff]  ;;  %v1916_v10 = vld [vmem:[%s2004_s16 + $0x10] sm:$0xff] }
 0x1c3   : > { %v1138_v43 = vsel %vm1126_vm4, %v1109_v41, %v3782_v28  ;;  %v1168_v63 = vsel %vm1155_vm5, %v1139_v33, %v2789_v44  ;;  %v3786_v44 = vld [vmem:[#allocation15_spill] sm:$0xff]  ;;  %v3791_v41 = vld [vmem:[#allocation50_spill] sm:$0xff] }
 0x1c4   : > { %921 = vrot.lane.b32.xlu2 %v3767_v36, %s1962_s22  ;;  %836 = vrot.lane.b32.xlu1 %v3768_v12, %s1963_s23  ;;  %v1167_v36 = vsel %vm1155_vm5, %v1138_v43, %v3783_v13  ;;  %v1071_v17 = vsel %vm1068_vm2, %v1916_v10, %v3791_v41  ;;  %v3792_v33 = vld [vmem:[#allocation74_spill] sm:$0xff]  ;;  %v3795_v13 = vld [vmem:[#allocation47_spill] sm:$0xff] }
 0x1c5   : > { %834 = vrot.lane.b32.xlu0 %v3771_v3, %s1963_s23  ;;  %v1098_v3 = vsel %vm1097_vm3, %v1069_v59, %v3785_v7  ;;  %v3793_v28 = vld [vmem:[#allocation94_spill] sm:$0xff] }
 0x1c6   : > { %v985_v21 = vpop.permute.xlu2 %984  ;;  %v743_v26 = vpop.permute.xlu1 %742  ;;  %v1127_v18 = vsel %vm1126_vm4, %v1098_v3, %v3787_v61 }
 0x1c7   : > { %v3064_v29 = vsel %vm1184_vm6, %v1165_v22, %v743_v26  ;;  %v741_v53 = vpop.permute.xlu0 %740  ;;  %v1156_v22 = vsel %vm1155_vm5, %v1127_v18, %v3788_v4 }
 0x1c8   : > { %v3067_v9 = vsel %vm1184_vm6, %v1164_v57, %v741_v53  ;;  %v1185_v57 = vsel %vm1184_vm6, %v1156_v22, %v2926_v35  ;;  %v3127_v35 = vld [vmem:[%s2004_s16 + $0x98] sm:$0xff] }
 0x1cc   : > { %1010 = vrot.lane.b32.xlu2 %v3777_v32, %s1964_s24  ;;  %1008 = vrot.lane.b32.xlu1 %v3778_v31, %s1964_s24 }
 0x1cd   : > { %923 = vrot.lane.b32.xlu0 %v3781_v47, %s1962_s22  ;;  %v1100_v47 = vsel %vm1097_vm3, %v1071_v17, %v3792_v33 }
 0x1ce   : > { %v989_v40 = vpop.permute.xlu2 %988  ;;  %v749_v39 = vpop.permute.xlu1 %748  ;;  %v1129_v43 = vsel %vm1126_vm4, %v1100_v47, %v3793_v28  ;;  %v3800_v47 = vld [vmem:[#allocation16_spill] sm:$0xff]  ;;  %v3801_v28 = vld [vmem:[#allocation18_spill] sm:$0xff] }
 0x1cf   : > { %v3094_v12 = vsel %vm1184_vm6, %v1168_v63, %v749_v39  ;;  %v747_v16 = vpop.permute.xlu0 %746  ;;  %v3794_v63 = vld [vmem:[#allocation32_spill] sm:$0xff] }
 0x1d0   : > { %v3097_v45 = vsel %vm1184_vm6, %v1167_v36, %v747_v16  ;;  %v1158_v39 = vsel %vm1155_vm5, %v1129_v43, %v3794_v63  ;;  %v3796_v36 = vld [vmem:[#allocation43_spill] sm:$0xff]  ;;  %v3802_v43 = vld [vmem:[#allocation54_spill] sm:$0xff] }
 0x1d1   : > { %v1187_v16 = vsel %vm1184_vm6, %v1158_v39, %v2965_v50 }
 0x1d4   : > { %838 = vrot.lane.b32.xlu2 %v3786_v44, %s1963_s23  ;;  %754 = vrot.lane.b32.xlu1 %v3777_v32, %s1961_s21  ;;  %v3790_v32 = vld [vmem:[#allocation19_spill] sm:$0xff] }
 0x1d5   : > { %752 = vrot.lane.b32.xlu0 %v3778_v31, %s1961_s21 }
 0x1d6   : > { %v3114_v26 = vpop.permute.xlu2 %903  ;;  %v813_v58 = vpop.permute.xlu1 %812 }
 0x1d7   : > { %v811_v53 = vpop.permute.xlu0 %810  ;;  %v1215_v20 = vsel %vm1213_vm13, %v2827_v2, %v813_v58 }
 0x1d8   : > { %v1214_v14 = vsel %vm1213_vm13, %v1185_v57, %v811_v53 }
 0x1d9   : > { %v1243_v27 = vsel %vm1242_vm14, %v1214_v14, %v2992_v30  ;;  %v1917_v14 = vld [vmem:[%s2004_s16 + $0xa8] sm:$0xff] }
 0x1da   : > { %v1272_v5 = vsel %vm1271_vm15, %v1243_v27, %v985_v21  ;;  %v3163_v27 = vld [vmem:[%s2004_s16 + $0xa0] sm:$0xff] }
 0x1db   : > { %v1328_v24 = vrot.slane %v1272_v5, 2  ;;  %v1329_v8 = vrot.slane %v1272_v5, 4  ;;  %v1330_v46 = vrot.slane %v1272_v5, 6  ;;  %1403 = vst [vmem:[#allocation1] ss:$4 sm:$0xff] %v1272_v5  ;;  %v3797_v5 = vld [vmem:[#allocation45_spill] sm:$0xff] }
 0x1dc   : > { %927 = vrot.lane.b32.xlu2 %v3789_v25, %s1962_s22  ;;  %925 = vrot.lane.b32.xlu1 %v3790_v32, %s1962_s22  ;;  %v3798_v25 = vld [vmem:[#allocation73_spill] sm:$0xff] }
 0x1dd   : > { %1405 = vst [vmem:[#allocation1 + $0x1] ss:$4 sm:$0xff] %v1328_v24  ;;  %840 = vrot.lane.b32.xlu0 %v3127_v35, %s1963_s23 }
 0x1de   : > { %1407 = vst [vmem:[#allocation1 + $0x2] ss:$4 sm:$0xff] %v1329_v8  ;;  %v3131_v30 = vpop.permute.xlu2 %992  ;;  %v815_v21 = vpop.permute.xlu1 %814 }
 0x1df   : > { %1409 = vst [vmem:[#allocation1 + $0x3] ss:$4 sm:$0xff] %v1330_v46  ;;  %v900_v31 = vpop.permute.xlu0 %899  ;;  %v1216_v59 = vsel %vm1213_vm13, %v1187_v16, %v815_v21 }
 0x1e0   : > { %v1244_v44 = vsel %vm1242_vm14, %v1215_v20, %v900_v31  ;;  %v3799_v31 = vld [vmem:[#allocation88_spill] sm:$0xff] }
 0x1e4   : > { %756 = vrot.lane.b32.xlu2 %v3795_v13, %s1961_s21  ;;  %1014 = vrot.lane.b32.xlu1 %v3796_v36, %s1964_s24 }
 0x1e5   : > { %1012 = vrot.lane.b32.xlu0 %v3795_v13, %s1964_s24 }
 0x1e6   : > { %v1418_v15 = vld.sshfl [vmem:[#allocation1] sm:$0xff pattern:$0x73625140]  ;;  %v3153_v7 = vpop.permute.xlu2 %907  ;;  %v902_v3 = vpop.permute.xlu1 %901 }
 0x1e7   : > { %1837 = vmatmul.msk.f32.vlgmr.msra.gmra.mxu0 %vm1533_vm7, %v1418_v15  ;;  %v1245_v50 = vsel %vm1242_vm14, %v1216_v59, %v902_v3  ;;  %v987_v61 = vpop.permute.xlu0 %986 }
 0x1e8   : > { %v1274_v18 = vsel %vm1271_vm15, %v1245_v50, %v989_v40  ;;  %v1273_v4 = vsel %vm1271_vm15, %v1244_v44, %v987_v61  ;;  %v1919_v40 = vld [vmem:[%s2004_s16 + $0x18] sm:$0xff] }
 0x1e9   : > { %v1333_v2 = vrot.slane %v1274_v18, 2  ;;  %v1334_v22 = vrot.slane %v1274_v18, 4  ;;  %v1335_v58 = vrot.slane %v1274_v18, 6  ;;  %1417 = vst [vmem:[#allocation1 + $0x23] ss:$4 sm:$0xff] %v1274_v18  ;;  %v1331_v57 = vrot.slane %v1273_v4, 2 }
 0x1ea   : > { %1411 = vst [vmem:[#allocation1 + $0x20] ss:$4 sm:$0xff] %v1273_v4  ;;  %v1332_v53 = vrot.slane %v1273_v4, 4  ;;  %v1072_v24 = vsel %vm1068_vm2, %v1919_v40, %v3797_v5 }
 0x1eb   : > { %1420 = vst [vmem:[#allocation1] ss:$4 sm:$0xff] %v1333_v2  ;;  %v1101_v32 = vsel %vm1097_vm3, %v1072_v24, %v3798_v25 }
 0x1ec   : > { %1421 = vst [vmem:[#allocation1 + $0x1] ss:$4 sm:$0xff] %v1334_v22  ;;  %844 = vrot.lane.b32.xlu2 %v1917_v14, %s1963_s23  ;;  %842 = vrot.lane.b32.xlu1 %v3163_v27, %s1963_s23  ;;  %v1130_v10 = vsel %vm1126_vm4, %v1101_v32, %v3799_v31 }
 0x1ed   : > { %1422 = vst [vmem:[#allocation1 + $0x2] ss:$4 sm:$0xff] %v1335_v58  ;;  %758 = vrot.lane.b32.xlu0 %v3796_v36, %s1961_s21  ;;  %v1159_v41 = vsel %vm1155_vm5, %v1130_v10, %v2746_v0  ;;  %v3804_v58 = vld [vmem:[#allocation53_spill] sm:$0xff] }
 0x1ee   : > { %1413 = vst [vmem:[#allocation1 + $0x21] ss:$4 sm:$0xff] %v1331_v57  ;;  %v997_v8 = vpop.permute.xlu2 %996  ;;  %v819_v46 = vpop.permute.xlu1 %818  ;;  %v1188_v17 = vsel %vm1184_vm6, %v1159_v41, %v2960_v62  ;;  %v3805_v57 = vld [vmem:[#allocation21_spill] sm:$0xff] }
 0x1ef   : > { %1415 = vst [vmem:[#allocation1 + $0x22] ss:$4 sm:$0xff] %v1332_v53  ;;  %v817_v21 = vpop.permute.xlu0 %816  ;;  %v1218_v62 = vsel %vm1213_vm13, %v2860_v48, %v819_v46  ;;  %v3803_v48 = vld [vmem:[#allocation51_spill] sm:$0xff]  ;;  %v1921_v41 = vld [vmem:[%s2004_s16 + $0xc0] sm:$0xff] }
 0x1f0   : > { %v1217_v33 = vsel %vm1213_vm13, %v1188_v17, %v817_v21 }
 0x1f1   : > { %v1246_v0 = vsel %vm1242_vm14, %v1217_v33, %v3114_v26  ;;  %v1920_v26 = vld [vmem:[%s2004_s16 + $0xb0] sm:$0xff] }
 0x1f4   : > { %931 = vrot.lane.b32.xlu2 %v3800_v47, %s1962_s22  ;;  %929 = vrot.lane.b32.xlu1 %v3801_v28, %s1962_s22 }
 0x1f5   : > { %760 = vrot.lane.b32.xlu0 %v3802_v43, %s1961_s21 }
 0x1f6   : > { %v1419_v63 = vld.sshfl [vmem:[#allocation1 + $0x20] sm:$0xff pattern:$0x73625140]  ;;  %v3187_v39 = vpop.permute.xlu2 %911  ;;  %v991_v13 = vpop.permute.xlu1 %990 }
 0x1f7   : > { %1838 = vmatmul.msk.f32.gmra.mxu0 %vm1533_vm7, %v1419_v63  ;;  %v1275_v36 = vsel %vm1271_vm15, %v1246_v0, %v991_v13  ;;  %v906_v16 = vpop.permute.xlu0 %905  ;;  %v3806_v63 = vld [vmem:[#allocation48_spill] sm:$0xff]  ;;  %v3807_v13 = vld [vmem:[#allocation26_spill] sm:$0xff] }
 0x1f8   : > { %v1336_v20 = vrot.slane %v1275_v36, 2  ;;  %v1337_v15 = vrot.slane %v1275_v36, 4  ;;  %1423 = vst [vmem:[#allocation1 + $0x3] ss:$4 sm:$0xff] %v1275_v36  ;;  %v1247_v59 = vsel %vm1242_vm14, %v1218_v62, %v906_v16  ;;  %v3808_v0 = vld [vmem:[#allocation20_spill] sm:$0xff] }
 0x1f9   : > { %v1276_v3 = vsel %vm1271_vm15, %v1247_v59, %v3131_v30 }
 0x1fa   : > { %1424 = vst [vmem:[#allocation1 + $0x20] ss:$4 sm:$0xff] %v1336_v20  ;;  %v1338_v44 = vrot.slane %v1276_v3, 2  ;;  %v1339_v50 = vrot.slane %v1276_v3, 4  ;;  %v1340_v2 = vrot.slane %v1276_v3, 6 }
 0x1fb   : > { %1425 = vst [vmem:[#allocation1 + $0x21] ss:$4 sm:$0xff] %v1337_v15 }
 0x1fc   : > { %1426 = vst [vmem:[#allocation1 + $0x22] ss:$4 sm:$0xff] %v1276_v3  ;;  %1018 = vrot.lane.b32.xlu2 %v3803_v48, %s1964_s24  ;;  %1016 = vrot.lane.b32.xlu1 %v3802_v43, %s1964_s24 }
 0x1fd   : > { %1427 = vst [vmem:[#allocation1 + $0x23] ss:$4 sm:$0xff] %v1338_v44  ;;  %846 = vrot.lane.b32.xlu0 %v1920_v26, %s1963_s23 }
 0x1fe   : > { %v1001_v61 = vpop.permute.xlu2 %1000  ;;  %v823_v18 = vpop.permute.xlu1 %822 }
 0x1ff   : > { %v1428_v4 = vld.sshfl [vmem:[#allocation1] sm:$0xff pattern:$0x73625140]  ;;  %v821_v30 = vpop.permute.xlu0 %820 }
 0x200   : > { %1430 = vst [vmem:[#allocation1] ss:$4 sm:$0xff] %v1339_v50  ;;  %1839 = vmatmul.msk.f32.gmra.mxu0 %vm1533_vm7, %v1428_v4  ;;  %v1219_v22 = vsel %vm1213_vm13, %v3013_v34, %v821_v30  ;;  %v1220_v34 = vsel %vm1213_vm13, %v3005_v38, %v823_v18  ;;  %v1922_v38 = vld [vmem:[%s2004_s16 + $0xb8] sm:$0xff] }
 0x201   : > { %1431 = vst [vmem:[#allocation1 + $0x1] ss:$4 sm:$0xff] %v1340_v2  ;;  %v1248_v40 = vsel %vm1242_vm14, %v1219_v22, %v3153_v7 }
 0x204   : > { %762 = vrot.lane.b32.xlu2 %v3803_v48, %s1961_s21  ;;  %1020 = vrot.lane.b32.xlu1 %v3804_v58, %s1964_s24  ;;  %v1429_v5 = vld.sshfl [vmem:[#allocation1 + $0x20] sm:$0xff pattern:$0x73625140] }
 0x205   : > { %933 = vrot.lane.b32.xlu0 %v3805_v57, %s1962_s22 }
 0x206   : > { %v3213_v53 = vpop.permute.xlu2 %915  ;;  %v995_v14 = vpop.permute.xlu1 %994 }
 0x207   : > { %v1277_v24 = vsel %vm1271_vm15, %v1248_v40, %v995_v14  ;;  %v910_v46 = vpop.permute.xlu0 %909 }
 0x208   : > { %v1341_v25 = vrot.slane %v1277_v24, 2  ;;  %v1342_v32 = vrot.slane %v1277_v24, 4  ;;  %1432 = vst [vmem:[#allocation1 + $0x2] ss:$4 sm:$0xff] %v1277_v24  ;;  %v1249_v21 = vsel %vm1242_vm14, %v1220_v34, %v910_v46  ;;  %1840 = vmatmul.msk.f32.gmra.mxu0 %vm1533_vm7, %v1429_v5  ;;  %v3810_v5 = vld [vmem:[#allocation24_spill] sm:$0xff]  ;;  %v1923_v34 = vld [vmem:[%s2004_s16 + $0xd0] sm:$0xff] }
 0x209   : > { %v1278_v31 = vsel %vm1271_vm15, %v1249_v21, %v997_v8  ;;  %v1924_v24 = vld [vmem:[%s2004_s16 + $0xc8] sm:$0xff]  ;;  %v3812_v21 = vld [vmem:[#allocation55_spill] sm:$0xff] }
 0x20a   : > { %1433 = vst [vmem:[#allocation1 + $0x3] ss:$4 sm:$0xff] %v1341_v25  ;;  %v1343_v7 = vrot.slane %v1278_v31, 2  ;;  %v1344_v10 = vrot.slane %v1278_v31, 4  ;;  %v1345_v8 = vrot.slane %v1278_v31, 6 }
 0x20b   : > { %1434 = vst [vmem:[#allocation1 + $0x20] ss:$4 sm:$0xff] %v1342_v32  ;;  %v3811_v32 = vld [vmem:[#allocation63_spill] sm:$0xff] }
 0x20c   : > { %1435 = vst [vmem:[#allocation1 + $0x21] ss:$4 sm:$0xff] %v1278_v31  ;;  %850 = vrot.lane.b32.xlu2 %v1921_v41, %s1963_s23  ;;  %848 = vrot.lane.b32.xlu1 %v1922_v38, %s1963_s23  ;;  %v3813_v31 = vld [vmem:[#allocation25_spill] sm:$0xff] }
 0x20d   : > { %1436 = vst [vmem:[#allocation1 + $0x22] ss:$4 sm:$0xff] %v1343_v7  ;;  %764 = vrot.lane.b32.xlu0 %v3804_v58, %s1961_s21 }
 0x20e   : > { %1437 = vst [vmem:[#allocation1 + $0x23] ss:$4 sm:$0xff] %v1344_v10  ;;  %v1003_v17 = vpop.permute.xlu2 %1002  ;;  %v827_v33 = vpop.permute.xlu1 %826 }
 0x20f   : > { %v825_v47 = vpop.permute.xlu0 %824  ;;  %v1222_v20 = vsel %vm1213_vm13, %v3067_v9, %v827_v33  ;;  %v3809_v9 = vld [vmem:[#allocation58_spill] sm:$0xff] }
 0x210   : > { %v1221_v43 = vsel %vm1213_vm13, %v2898_v37, %v825_v47 }
 0x211   : > { %v1438_v28 = vld.sshfl [vmem:[#allocation1] sm:$0xff pattern:$0x73625140]  ;;  %v1250_v16 = vsel %vm1242_vm14, %v1221_v43, %v3187_v39 }
 0x212   : > { %1440 = vst [vmem:[#allocation1] ss:$4 sm:$0xff] %v1345_v8  ;;  %1841 = vmatmul.msk.f32.gmra.mxu0 %vm1533_vm7, %v1438_v28 }
 0x214   : > { %1022 = vrot.lane.b32.xlu2 %v3806_v63, %s1964_s24  ;;  %937 = vrot.lane.b32.xlu1 %v3807_v13, %s1962_s22  ;;  %v1925_v13 = vld [vmem:[%s2004_s16 + $0xd8] sm:$0xff] }
 0x215   : > { %935 = vrot.lane.b32.xlu0 %v3808_v0, %s1962_s22  ;;  %v1439_v48 = vld.sshfl [vmem:[#allocation1 + $0x20] sm:$0xff pattern:$0x73625140] }
 0x216   : > { %v1007_v62 = vpop.permute.xlu2 %1006  ;;  %v999_v36 = vpop.permute.xlu1 %998 }
 0x217   : > { %v1279_v15 = vsel %vm1271_vm15, %v1250_v16, %v999_v36  ;;  %v914_v37 = vpop.permute.xlu0 %913 }
 0x218   : > { %v1346_v59 = vrot.slane %v1279_v15, 2  ;;  %v1347_v3 = vrot.slane %v1279_v15, 4  ;;  %1441 = vst [vmem:[#allocation1 + $0x1] ss:$4 sm:$0xff] %v1279_v15  ;;  %v1251_v44 = vsel %vm1242_vm14, %v1222_v20, %v914_v37 }
 0x219   : > { %v1280_v26 = vsel %vm1271_vm15, %v1251_v44, %v1001_v61 }
 0x21a   : > { %1442 = vst [vmem:[#allocation1 + $0x2] ss:$4 sm:$0xff] %v1346_v59  ;;  %v1348_v50 = vrot.slane %v1280_v26, 2  ;;  %v1349_v18 = vrot.slane %v1280_v26, 4  ;;  %1842 = vmatmul.msk.f32.gmra.mxu0 %vm1533_vm7, %v1439_v48  ;;  %v1350_v39 = vrot.slane %v1280_v26, 6  ;;  %v1926_v59 = vld [vmem:[%s2004_s16 + $0xe0] sm:$0xff] }
 0x21b   : > { %1443 = vst [vmem:[#allocation1 + $0x3] ss:$4 sm:$0xff] %v1347_v3  ;;  %v1927_v3 = vld [vmem:[%s2004_s16 + $0xe8] sm:$0xff]  ;;  %v721_v48 = vrot.slane %v1926_v59, 2 }
 0x21c   : > { %1444 = vst [vmem:[#allocation1 + $0x20] ss:$4 sm:$0xff] %v1280_v26  ;;  %768 = vrot.lane.b32.xlu2 %v3809_v9, %s1961_s21  ;;  %766 = vrot.lane.b32.xlu1 %v3806_v63, %s1961_s21  ;;  %v3299_v44 = vrot.slane %v1927_v3, 2  ;;  %v3815_v26 = vld [vmem:[#allocation61_spill] sm:$0xff] }
 0x21d   : > { %1445 = vst [vmem:[#allocation1 + $0x21] ss:$4 sm:$0xff] %v1348_v50  ;;  %1024 = vrot.lane.b32.xlu0 %v3809_v9, %s1964_s24 }
 0x21e   : > { %1446 = vst [vmem:[#allocation1 + $0x22] ss:$4 sm:$0xff] %v1349_v18  ;;  %v3252_v61 = vpop.permute.xlu2 %921  ;;  %v831_v4 = vpop.permute.xlu1 %830 }
 0x21f   : > { %1447 = vst [vmem:[#allocation1 + $0x23] ss:$4 sm:$0xff] %v1350_v39  ;;  %v829_v2 = vpop.permute.xlu0 %828  ;;  %v1224_v7 = vsel %vm1213_vm13, %v2931_v6, %v831_v4 }
 0x220   : > { %v1223_v30 = vsel %vm1213_vm13, %v3064_v29, %v829_v2 }
 0x221   : > { %v1252_v22 = vsel %vm1242_vm14, %v1223_v30, %v3213_v53 }
 0x222   : > { %v1448_v58 = vld.sshfl [vmem:[#allocation1] sm:$0xff pattern:$0x73625140]  ;;  %v1281_v57 = vsel %vm1271_vm15, %v1252_v22, %v1003_v17 }
 0x223   : > { %v1351_v14 = vrot.slane %v1281_v57, 2  ;;  %v1352_v40 = vrot.slane %v1281_v57, 4  ;;  %1450 = vst [vmem:[#allocation1] ss:$4 sm:$0xff] %v1281_v57  ;;  %1843 = vmatmul.msk.f32.vlgmr.msra.gmra.mxu1 %vm1533_vm7, %v1448_v58 }
 0x224   : > { %939 = vrot.lane.b32.xlu2 %v3810_v5, %s1962_s22  ;;  %854 = vrot.lane.b32.xlu1 %v1923_v34, %s1963_s23 }
 0x225   : > { %1451 = vst [vmem:[#allocation1 + $0x1] ss:$4 sm:$0xff] %v1351_v14  ;;  %852 = vrot.lane.b32.xlu0 %v1924_v24, %s1963_s23 }
 0x226   : > { %1452 = vst [vmem:[#allocation1 + $0x2] ss:$4 sm:$0xff] %v1352_v40  ;;  %v1011_v29 = vpop.permute.xlu2 %1010  ;;  %v833_v53 = vpop.permute.xlu1 %832  ;;  %v1449_v25 = vld.sshfl [vmem:[#allocation1 + $0x20] sm:$0xff pattern:$0x73625140] }
 0x227   : > { %v918_v46 = vpop.permute.xlu0 %917  ;;  %v1225_v10 = vsel %vm1213_vm13, %v3097_v45, %v833_v53  ;;  %v3814_v45 = vld [vmem:[#allocation23_spill] sm:$0xff] }
 0x228   : > { %v1253_v17 = vsel %vm1242_vm14, %v1224_v7, %v918_v46  ;;  %v264_v46 = vld [vmem:[%s2004_s16 + $0xf0] sm:$0xff] }
 0x22b   : > { %1844 = vmatmul.msk.f32.gmra.mxu1 %vm1533_vm7, %v1449_v25  ;;  %v3817_v25 = vld [vmem:[#allocation97_spill] sm:$0xff] }
 0x22c   : > { %1028 = vrot.lane.b32.xlu2 %v3811_v32, %s1964_s24  ;;  %1026 = vrot.lane.b32.xlu1 %v3812_v21, %s1964_s24 }
 0x22d   : > { %941 = vrot.lane.b32.xlu0 %v3813_v31, %s1962_s22  ;;  %v3818_v31 = vld [vmem:[#allocation67_spill] sm:$0xff] }
 0x22e   : > { %v3277_v41 = vpop.permute.xlu2 %838  ;;  %v920_v38 = vpop.permute.xlu1 %919 }
 0x22f   : > { %v1254_v33 = vsel %vm1242_vm14, %v1225_v10, %v920_v38  ;;  %v1005_v47 = vpop.permute.xlu0 %1004  ;;  %v3332_v38 = vld [vmem:[%s2004_s16 + $0xf8] sm:$0xff] }
 0x230   : > { %v1283_v8 = vsel %vm1271_vm15, %v1254_v33, %v1007_v62  ;;  %v1282_v28 = vsel %vm1271_vm15, %v1253_v17, %v1005_v47  ;;  %v1929_v17 = vld [vmem:[%s2004_s16 + $0x70] sm:$0xff]  ;;  %v3819_v33 = vld [vmem:[#allocation49_spill] sm:$0xff] }
 0x231   : > { %1457 = vst [vmem:[#allocation1 + $0x23] ss:$4 sm:$0xff] %v1283_v8  ;;  %v1353_v43 = vrot.slane %v1282_v28, 2  ;;  %v1354_v63 = vrot.slane %v1282_v28, 4  ;;  %v1355_v6 = vrot.slane %v1282_v28, 6  ;;  %v1356_v16 = vrot.slane %v1283_v8, 2 }
 0x232   : > { %1453 = vst [vmem:[#allocation1 + $0x3] ss:$4 sm:$0xff] %v1282_v28  ;;  %v1357_v20 = vrot.slane %v1283_v8, 4  ;;  %v1083_v47 = vsel %vm1068_vm2, %v1929_v17, %v3819_v33  ;;  %v3820_v8 = vld [vmem:[#allocation83_spill] sm:$0xff] }
 0x233   : > { %1454 = vst [vmem:[#allocation1 + $0x20] ss:$4 sm:$0xff] %v1353_v43 }
 0x234   : > { %1455 = vst [vmem:[#allocation1 + $0x21] ss:$4 sm:$0xff] %v1354_v63  ;;  %943 = vrot.lane.b32.xlu2 %v3814_v45, %s1962_s22  ;;  %856 = vrot.lane.b32.xlu1 %v1925_v13, %s1963_s23  ;;  %v895_v63 = vrot.slane %v3332_v38, 1  ;;  %v3822_v13 = vld [vmem:[#allocation95_spill] sm:$0xff] }
 0x235   : > { %1456 = vst [vmem:[#allocation1 + $0x22] ss:$4 sm:$0xff] %v1355_v6  ;;  %770 = vrot.lane.b32.xlu0 %v3812_v21, %s1961_s21  ;;  %v1928_v21 = vld [vmem:[%s2004_s16 + $0x78] sm:$0xff] }
 0x236   : > { %v3289_v0 = vpop.permute.xlu2 %927  ;;  %v837_v62 = vpop.permute.xlu1 %836  ;;  %v1084_v7 = vsel %vm1068_vm2, %v1928_v21, %v3818_v31  ;;  %v3821_v6 = vld [vmem:[#allocation84_spill] sm:$0xff] }
 0x237   : > { %v835_v36 = vpop.permute.xlu0 %834  ;;  %v1113_v28 = vsel %vm1097_vm3, %v1084_v7, %v3820_v8  ;;  %v1112_v45 = vsel %vm1097_vm3, %v1083_v47, %v3821_v6  ;;  %v3828_v7 = vld [vmem:[#allocation107_spill] sm:$0xff] }
 0x238   : > { %v1226_v37 = vsel %vm1213_vm13, %v3094_v12, %v835_v36  ;;  %v1227_v12 = vsel %vm1213_vm13, %v2963_v54, %v837_v62  ;;  %v3816_v54 = vld [vmem:[#allocation100_spill] sm:$0xff]  ;;  %v1142_v62 = vsel %vm1126_vm4, %v1113_v28, %v3822_v13  ;;  %v3823_v36 = vld [vmem:[#allocation103_spill] sm:$0xff] }
 0x239   : > { %v1458_v15 = vld.sshfl [vmem:[#allocation1] sm:$0xff pattern:$0x73625140]  ;;  %v1255_v18 = vsel %vm1242_vm14, %v1226_v37, %v3252_v61  ;;  %v723_v61 = vsel %vm421_vm1, %v721_v48, %v3299_v44 }
 0x23a   : > { %1460 = vst [vmem:[#allocation1] ss:$4 sm:$0xff] %v1356_v16  ;;  %1845 = vmatmul.msk.f32.gmra.mxu1 %vm1533_vm7, %v1458_v15  ;;  %v1141_v16 = vsel %vm1126_vm4, %v1112_v45, %v3823_v36  ;;  %v1931_v36 = vld [vmem:[%s2004_s16 + $0x80] sm:$0xff] }
 0x23b   : > { %1461 = vst [vmem:[#allocation1 + $0x1] ss:$4 sm:$0xff] %v1357_v20  ;;  %v1171_v20 = vsel %vm1155_vm5, %v1142_v62, %v2808_v60 }
 0x23c   : > { %858 = vrot.lane.b32.xlu2 %v1926_v59, %s1963_s23  ;;  %772 = vrot.lane.b32.xlu1 %v3811_v32, %s1961_s21  ;;  %v1459_v57 = vld.sshfl [vmem:[#allocation1 + $0x20] sm:$0xff pattern:$0x73625140]  ;;  %v894_v32 = vrot.slane %v264_v46, 1  ;;  %v3824_v59 = vld [vmem:[#allocation106_spill] sm:$0xff] }
 0x23d   : > { %1030 = vrot.lane.b32.xlu0 %v3815_v26, %s1964_s24 }
 0x23e   : > { %v1009_v50 = vpop.permute.xlu1 %1008  ;;  %v3308_v4 = vpop.permute.xlu2 %756  ;;  %v896_v37 = vsel %vm294_vm0, %v894_v32, %v895_v63 }
 0x23f   : > { %v1284_v39 = vsel %vm1271_vm15, %v1255_v18, %v1009_v50  ;;  %v924_v9 = vpop.permute.xlu0 %923 }
 0x240   : > { %v1358_v2 = vrot.slane %v1284_v39, 2  ;;  %v1359_v30 = vrot.slane %v1284_v39, 4  ;;  %v1360_v22 = vrot.slane %v1284_v39, 6  ;;  %1462 = vst [vmem:[#allocation1 + $0x2] ss:$4 sm:$0xff] %v1284_v39  ;;  %v1256_v58 = vsel %vm1242_vm14, %v1227_v12, %v924_v9 }
 0x241   : > { %v1285_v14 = vsel %vm1271_vm15, %v1256_v58, %v1011_v29  ;;  %v981_v12 = vrot.slane %v264_v46, 2 }
 0x242   : > { %1463 = vst [vmem:[#allocation1 + $0x3] ss:$4 sm:$0xff] %v1358_v2  ;;  %v1361_v40 = vrot.slane %v1285_v14, 2  ;;  %1846 = vmatmul.msk.f32.gmra.mxu1 %vm1533_vm7, %v1459_v57  ;;  %v1362_v24 = vrot.slane %v1285_v14, 4  ;;  %v982_v2 = vrot.slane %v3332_v38, 2 }
 0x243   : > { %1464 = vst [vmem:[#allocation1 + $0x20] ss:$4 sm:$0xff] %v1359_v30 }
 0x244   : > { %1465 = vst [vmem:[#allocation1 + $0x21] ss:$4 sm:$0xff] %v1360_v22  ;;  %774 = vrot.lane.b32.xlu2 %v3815_v26, %s1961_s21  ;;  %1032 = vrot.lane.b32.xlu1 %v723_v61, %s1964_s24 }
 0x245   : > { %1466 = vst [vmem:[#allocation1 + $0x22] ss:$4 sm:$0xff] %v1285_v14  ;;  %945 = vrot.lane.b32.xlu0 %v3816_v54, %s1962_s22 }
 0x246   : > { %1467 = vst [vmem:[#allocation1 + $0x23] ss:$4 sm:$0xff] %v1361_v40  ;;  %v755_v5 = vpop.permute.xlu1 %754  ;;  %v3320_v53 = vpop.permute.xlu2 %844 }
 0x247   : > { %v753_v34 = vpop.permute.xlu0 %752  ;;  %v1200_v48 = vsel %vm1184_vm6, %v1171_v20, %v755_v5  ;;  %v1930_v5 = vld [vmem:[%s2004_s16 + $0x88] sm:$0xff] }
 0x249   : > { %v1468_v29 = vld.sshfl [vmem:[#allocation1] sm:$0xff pattern:$0x73625140] }
 0x24a   : > { %1470 = vst [vmem:[#allocation1] ss:$4 sm:$0xff] %v1362_v24  ;;  %1847 = vmatmul.msk.f32.gmra.mxu1 %vm1533_vm7, %v1468_v29  ;;  %v3826_v29 = vld [vmem:[#allocation87_spill] sm:$0xff] }
 0x24c   : > { %776 = vrot.lane.b32.xlu1 %v723_v61, %s1961_s21  ;;  %947 = vrot.lane.b32.xlu2 %v3817_v25, %s1962_s22  ;;  %v3827_v25 = vld [vmem:[#allocation28_spill] sm:$0xff] }
 0x24d   : > { %860 = vrot.lane.b32.xlu0 %v1927_v3, %s1963_s23  ;;  %v1469_v15 = vld.sshfl [vmem:[#allocation1 + $0x20] sm:$0xff pattern:$0x73625140]  ;;  %v1170_v3 = vsel %vm1155_vm5, %v1141_v16, %v3824_v59  ;;  %v3829_v16 = vld [vmem:[#allocation66_spill] sm:$0xff] }
 0x24e   : > { %v926_v10 = vpop.permute.xlu1 %925  ;;  %v1199_v26 = vsel %vm1184_vm6, %v1170_v3, %v753_v34  ;;  %v932_v18 = vpop.permute.xlu2 %931  ;;  %v3825_v34 = vld [vmem:[#allocation56_spill] sm:$0xff]  ;;  %v1085_v20 = vsel %vm1068_vm2, %v1931_v36, %v3829_v16  ;;  %v3831_v3 = vld [vmem:[#allocation105_spill] sm:$0xff]  ;;  %v3838_v36 = vld [vmem:[#allocation59_spill] sm:$0xff] }
 0x24f   : > { %v841_v43 = vpop.permute.xlu0 %840  ;;  %v1228_v60 = vsel %vm1213_vm13, %v1199_v26, %v3277_v41  ;;  %v1086_v24 = vsel %vm1068_vm2, %v1930_v5, %v3825_v34 }
 0x250   : > { %v1229_v50 = vsel %vm1213_vm13, %v1200_v48, %v841_v43  ;;  %v1257_v30 = vsel %vm1242_vm14, %v1228_v60, %v926_v10 }
 0x251   : > { %v1258_v9 = vsel %vm1242_vm14, %v1229_v50, %v3289_v0  ;;  %v983_v0 = vsel %vm421_vm1, %v981_v12, %v982_v2 }
 0x252   : > { %1848 = vmatmul.msk.f32.gmra.mxu1 %vm1533_vm7, %v1469_v15 }
 0x254   : > { %1034 = vrot.lane.b32.xlu1 %v3299_v44, %s1964_s24  ;;  %949 = vrot.lane.b32.xlu2 %v896_v37, %s1962_s22  ;;  %v3830_v37 = vld [vmem:[#allocation75_spill] sm:$0xff] }
 0x255   : > { %862 = vrot.lane.b32.xlu0 %v264_v46, %s1963_s23  ;;  %v1115_v46 = vsel %vm1097_vm3, %v1086_v24, %v3826_v29  ;;  %v1114_v59 = vsel %vm1097_vm3, %v1085_v20, %v3830_v37  ;;  %v3839_v37 = vld [vmem:[#allocation89_spill] sm:$0xff] }
 0x256   : > { %v1015_v39 = vpop.permute.xlu1 %1014  ;;  %v1144_v32 = vsel %vm1126_vm4, %v1115_v46, %v3827_v25  ;;  %v1019_v21 = vpop.permute.xlu2 %1018  ;;  %v1143_v48 = vsel %vm1126_vm4, %v1114_v59, %v3831_v3 }
 0x257   : > { %v1287_v22 = vsel %vm1271_vm15, %v1258_v9, %v1015_v39  ;;  %v1013_v58 = vpop.permute.xlu0 %1012  ;;  %v1173_v10 = vsel %vm1155_vm5, %v1144_v32, %v3828_v7 }
 0x258   : > { %v1366_v57 = vrot.slane %v1287_v22, 2  ;;  %v1367_v14 = vrot.slane %v1287_v22, 4  ;;  %1475 = vst [vmem:[#allocation1 + $0x21] ss:$4 sm:$0xff] %v1287_v22  ;;  %v1286_v61 = vsel %vm1271_vm15, %v1257_v30, %v1013_v58  ;;  %v1932_v30 = vld [vmem:[%s2004_s16 + $0x90] sm:$0xff]  ;;  %v3833_v58 = vld [vmem:[#allocation86_spill] sm:$0xff] }
 0x259   : > { %v1363_v40 = vrot.slane %v1286_v61, 2  ;;  %v1364_v41 = vrot.slane %v1286_v61, 4  ;;  %1471 = vst [vmem:[#allocation1 + $0x1] ss:$4 sm:$0xff] %v1286_v61  ;;  %v1365_v54 = vrot.slane %v1286_v61, 6 }
 0x25a   : > { %1476 = vst [vmem:[#allocation1 + $0x22] ss:$4 sm:$0xff] %v1366_v57 }
 0x25b   : > { %1477 = vst [vmem:[#allocation1 + $0x23] ss:$4 sm:$0xff] %v1367_v14  ;;  %v3834_v14 = vld [vmem:[#allocation98_spill] sm:$0xff] }
 0x25c   : > { %1472 = vst [vmem:[#allocation1 + $0x2] ss:$4 sm:$0xff] %v1363_v40  ;;  %778 = vrot.lane.b32.xlu1 %v3299_v44, %s1961_s21  ;;  %864 = vrot.lane.b32.xlu2 %v3332_v38, %s1963_s23  ;;  %v1172_v38 = vsel %vm1155_vm5, %v1143_v48, %v2803_v11  ;;  %v3832_v11 = vld [vmem:[#allocation69_spill] sm:$0xff]  ;;  %v3840_v48 = vld [vmem:[#allocation34_spill] sm:$0xff] }
 0x25d   : > { %1473 = vst [vmem:[#allocation1 + $0x3] ss:$4 sm:$0xff] %v1364_v41  ;;  %1036 = vrot.lane.b32.xlu0 %v983_v0, %s1964_s24  ;;  %v1087_v22 = vsel %vm1068_vm2, %v1932_v30, %v3832_v11 }
 0x25e   : > { %1474 = vst [vmem:[#allocation1 + $0x20] ss:$4 sm:$0xff] %v1365_v54  ;;  %v843_v31 = vpop.permute.xlu1 %842  ;;  %v763_v15 = vpop.permute.xlu2 %762  ;;  %v1116_v57 = vsel %vm1097_vm3, %v1087_v22, %v3833_v58 }
 0x25f   : > { %v759_v44 = vpop.permute.xlu0 %758  ;;  %v1145_v61 = vsel %vm1126_vm4, %v1116_v57, %v3834_v14 }
 0x260   : > { %v1202_v17 = vsel %vm1184_vm6, %v1173_v10, %v759_v44  ;;  %v1174_v41 = vsel %vm1155_vm5, %v1145_v61, %v2829_v23 }
 0x261   : > { %v1231_v33 = vsel %vm1213_vm13, %v1202_v17, %v3320_v53  ;;  %v3835_v17 = vld [vmem:[#allocation68_spill] sm:$0xff] }
 0x262   : > { %v1260_v47 = vsel %vm1242_vm14, %v1231_v33, %v932_v18  ;;  %v1088_v33 = vsel %vm1068_vm2, %v3127_v35, %v3835_v17  ;;  %v1089_v35 = vsel %vm1068_vm2, %v3163_v27, %v3838_v36 }
 0x263   : > { %v1289_v8 = vsel %vm1271_vm15, %v1260_v47, %v1019_v21  ;;  %v3836_v47 = vld [vmem:[#allocation78_spill] sm:$0xff]  ;;  %v1118_v59 = vsel %vm1097_vm3, %v1089_v35, %v3839_v37 }
 0x264   : > { %v1478_v28 = vld.sshfl [vmem:[#allocation1] sm:$0xff pattern:$0x73625140]  ;;  %v1371_v43 = vrot.slane %v1289_v8, 2  ;;  %v1372_v6 = vrot.slane %v1289_v8, 4  ;;  %v1605_v45 = vpop.f32.mrf.mxu0  ;;  %1038 = vrot.lane.b32.xlu1 %v982_v2, %s1964_s24 }
 0x265   : > { %v1479_v13 = vld.sshfl [vmem:[#allocation1 + $0x20] sm:$0xff pattern:$0x73625140]  ;;  %1680 = vst [vmem:[%s3392_s13] sm:$0xff] %v1605_v45  ;;  %1849 = vmatmul.msk.f32.vlgmr.msra.gmra.mxu2 %vm1533_vm7, %v1478_v28  ;;  %951 = vrot.lane.b32.xlu0 %v895_v63, %s1962_s22  ;;  %v1201_v63 = vsel %vm1184_vm6, %v1172_v38, %v3308_v4  ;;  %v3841_v38 = vld [vmem:[#allocation108_spill] sm:$0xff] }
 0x266   : > { %1484 = vst [vmem:[#allocation1 + $0x20] ss:$4 sm:$0xff] %v1289_v8  ;;  %v930_v53 = vpop.permute.xlu1 %929  ;;  %v1230_v26 = vsel %vm1213_vm13, %v1201_v63, %v843_v31  ;;  %v851_v4 = vpop.permute.xlu2 %850  ;;  %v1117_v8 = vsel %vm1097_vm3, %v1088_v33, %v3836_v47  ;;  %v3837_v28 = vld [vmem:[#allocation29_spill] sm:$0xff] }
 0x267   : > { %1485 = vst [vmem:[#allocation1 + $0x21] ss:$4 sm:$0xff] %v1371_v43  ;;  %v761_v62 = vpop.permute.xlu0 %760  ;;  %v1259_v50 = vsel %vm1242_vm14, %v1230_v26, %v930_v53  ;;  %v1146_v43 = vsel %vm1126_vm4, %v1117_v8, %v3837_v28 }
 0x268   : > { %1486 = vst [vmem:[#allocation1 + $0x22] ss:$4 sm:$0xff] %v1372_v6  ;;  %v1203_v54 = vsel %vm1184_vm6, %v1174_v41, %v761_v62  ;;  %v1175_v6 = vsel %vm1155_vm5, %v1146_v43, %v2824_v19  ;;  %v1147_v19 = vsel %vm1126_vm4, %v1118_v59, %v3840_v48 }
 0x269   : > { %v1176_v63 = vsel %vm1155_vm5, %v1147_v19, %v3841_v38 }
 0x26d   : > { %1850 = vmatmul.msk.f32.gmra.mxu2 %vm1533_vm7, %v1479_v13  ;;  %v1204_v13 = vsel %vm1184_vm6, %v1175_v6, %v763_v15 }
 0x26e   : > { %v1017_v18 = vpop.permute.xlu1 %1016  ;;  %v1023_v31 = vpop.permute.xlu2 %1022 }
 0x26f   : > { %v1288_v60 = vsel %vm1271_vm15, %v1259_v50, %v1017_v18  ;;  %v847_v12 = vpop.permute.xlu0 %846 }
 0x270   : > { %v1368_v39 = vrot.slane %v1288_v60, 2  ;;  %v1369_v9 = vrot.slane %v1288_v60, 4  ;;  %v1370_v2 = vrot.slane %v1288_v60, 6  ;;  %1480 = vst [vmem:[#allocation1] ss:$4 sm:$0xff] %v1288_v60  ;;  %v1232_v5 = vsel %vm1213_vm13, %v1203_v54, %v847_v12 }
 0x272   : > { %1481 = vst [vmem:[#allocation1 + $0x1] ss:$4 sm:$0xff] %v1368_v39 }
 0x273   : > { %1482 = vst [vmem:[#allocation1 + $0x2] ss:$4 sm:$0xff] %v1369_v9 }
 0x274   : > { %1483 = vst [vmem:[#allocation1 + $0x3] ss:$4 sm:$0xff] %v1370_v2  ;;  %v1608_v40 = vpop.f32.mrf.mxu0 }
 0x275   : > { %1681 = vst [vmem:[%s3392_s13 + $0x8] sm:$0xff] %v1608_v40 }
 0x276   : > { %v1021_v0 = vpop.permute.xlu1 %1020  ;;  %v769_v53 = vpop.permute.xlu2 %768 }
 0x277   : > { %v934_v34 = vpop.permute.xlu0 %933 }
 0x278   : > { %v1261_v24 = vsel %vm1242_vm14, %v1232_v5, %v934_v34  ;;  %v1207_v5 = vsel %vm1184_vm6, %v2863_v42, %v769_v53 }
 0x279   : > { %v1290_v29 = vsel %vm1271_vm15, %v1261_v24, %v1021_v0 }
 0x27a   : > { %v1373_v46 = vrot.slane %v1290_v29, 2  ;;  %v1374_v25 = vrot.slane %v1290_v29, 4  ;;  %v1375_v32 = vrot.slane %v1290_v29, 6  ;;  %1487 = vst [vmem:[#allocation1 + $0x23] ss:$4 sm:$0xff] %v1290_v29 }
 0x27b   : > { %v1488_v21 = vld.sshfl [vmem:[#allocation1] sm:$0xff pattern:$0x73625140] }
 0x27c   : > { %1490 = vst [vmem:[#allocation1] ss:$4 sm:$0xff] %v1373_v46  ;;  %1851 = vmatmul.msk.f32.gmra.mxu2 %vm1533_vm7, %v1488_v21 }
 0x27d   : > { %1491 = vst [vmem:[#allocation1 + $0x1] ss:$4 sm:$0xff] %v1374_v25  ;;  %v1611_v23 = vpop.f32.mrf.mxu0 }
 0x27e   : > { %1492 = vst [vmem:[#allocation1 + $0x2] ss:$4 sm:$0xff] %v1375_v32  ;;  %v849_v7 = vpop.permute.xlu1 %848  ;;  %v940_v2 = vpop.permute.xlu2 %939 }
 0x27f   : > { %1682 = vst [vmem:[%s3392_s13 + $0x10] sm:$0xff] %v1611_v23  ;;  %v765_v10 = vpop.permute.xlu0 %764  ;;  %v1233_v16 = vsel %vm1213_vm13, %v1204_v13, %v849_v7 }
 0x280   : > { %v1205_v27 = vsel %vm1184_vm6, %v1176_v63, %v765_v10 }
 0x281   : > { %v1489_v44 = vld.sshfl [vmem:[#allocation1 + $0x20] sm:$0xff pattern:$0x73625140]  ;;  %v1234_v18 = vsel %vm1213_vm13, %v1205_v27, %v851_v4 }
 0x284   : > { %1852 = vmatmul.msk.f32.gmra.mxu2 %vm1533_vm7, %v1489_v44 }
 0x285   : > { %v1614_v45 = vpop.f32.mrf.mxu0 }
 0x286   : > { %1683 = vst [vmem:[%s3392_s13 + $0x18] sm:$0xff] %v1614_v45  ;;  %v938_v62 = vpop.permute.xlu1 %937  ;;  %v1029_v40 = vpop.permute.xlu2 %1028 }
 0x287   : > { %v936_v20 = vpop.permute.xlu0 %935  ;;  %v1263_v12 = vsel %vm1242_vm14, %v1234_v18, %v938_v62 }
 0x288   : > { %v1262_v3 = vsel %vm1242_vm14, %v1233_v16, %v936_v20 }
 0x289   : > { %v1291_v15 = vsel %vm1271_vm15, %v1262_v3, %v1023_v31 }
 0x28a   : > { %v1376_v26 = vrot.slane %v1291_v15, 2  ;;  %v1377_v50 = vrot.slane %v1291_v15, 4  ;;  %1493 = vst [vmem:[#allocation1 + $0x3] ss:$4 sm:$0xff] %v1291_v15 }
 0x28c   : > { %1494 = vst [vmem:[#allocation1 + $0x20] ss:$4 sm:$0xff] %v1376_v26 }
 0x28d   : > { %1495 = vst [vmem:[#allocation1 + $0x21] ss:$4 sm:$0xff] %v1377_v50 }
 0x28e   : > { %v767_v60 = vpop.permute.xlu1 %766  ;;  %v944_v10 = vpop.permute.xlu2 %943 }
 0x28f   : > { %v1025_v39 = vpop.permute.xlu0 %1024  ;;  %v1617_v9 = vpop.f32.mrf.mxu0  ;;  %v1206_v41 = vsel %vm1184_vm6, %v2866_v52, %v767_v60 }
 0x290   : > { %v1292_v30 = vsel %vm1271_vm15, %v1263_v12, %v1025_v39  ;;  %1684 = vst [vmem:[%s3392_s13 + $0x20] sm:$0xff] %v1617_v9 }
 0x291   : > { %v1378_v11 = vrot.slane %v1292_v30, 2  ;;  %v1379_v22 = vrot.slane %v1292_v30, 4  ;;  %v1380_v58 = vrot.slane %v1292_v30, 6  ;;  %1496 = vst [vmem:[#allocation1 + $0x22] ss:$4 sm:$0xff] %v1292_v30 }
 0x292   : > { %v1498_v57 = vld.sshfl [vmem:[#allocation1] sm:$0xff pattern:$0x73625140] }
 0x293   : > { %1497 = vst [vmem:[#allocation1 + $0x23] ss:$4 sm:$0xff] %v1378_v11  ;;  %1853 = vmatmul.msk.f32.gmra.mxu2 %vm1533_vm7, %v1498_v57 }
 0x294   : > { %1500 = vst [vmem:[#allocation1] ss:$4 sm:$0xff] %v1379_v22 }
 0x295   : > { %1501 = vst [vmem:[#allocation1 + $0x1] ss:$4 sm:$0xff] %v1380_v58 }
 0x296   : > { %v855_v4 = vpop.permute.xlu1 %854  ;;  %v859_v45 = vpop.permute.xlu2 %858 }
 0x297   : > { %v853_v14 = vpop.permute.xlu0 %852  ;;  %v1620_v61 = vpop.f32.mrf.mxu0  ;;  %v1236_v29 = vsel %vm1213_vm13, %v1207_v5, %v855_v4 }
 0x298   : > { %1685 = vst [vmem:[%s3392_s13 + $0x28] sm:$0xff] %v1620_v61  ;;  %v1235_v0 = vsel %vm1213_vm13, %v1206_v41, %v853_v14 }
 0x299   : > { %v1264_v24 = vsel %vm1242_vm14, %v1235_v0, %v940_v2 }
 0x29a   : > { %v1499_v54 = vld.sshfl [vmem:[#allocation1 + $0x20] sm:$0xff pattern:$0x73625140] }
 0x29b   : > { %1854 = vmatmul.msk.f32.gmra.mxu2 %vm1533_vm7, %v1499_v54 }
 0x29e   : > { %v1027_v34 = vpop.permute.xlu1 %1026  ;;  %v775_v48 = vpop.permute.xlu2 %774 }
 0x29f   : > { %v1293_v46 = vsel %vm1271_vm15, %v1264_v24, %v1027_v34  ;;  %v942_v25 = vpop.permute.xlu0 %941  ;;  %v1210_v12 = vsel %vm1184_vm6, %v2901_v51, %v775_v48 }
 0x2a0   : > { %v1381_v32 = vrot.slane %v1293_v46, 2  ;;  %v1382_v21 = vrot.slane %v1293_v46, 4  ;;  %1502 = vst [vmem:[#allocation1 + $0x2] ss:$4 sm:$0xff] %v1293_v46  ;;  %v1265_v52 = vsel %vm1242_vm14, %v1236_v29, %v942_v25  ;;  %v1623_v31 = vpop.f32.mrf.mxu1 }
 0x2a1   : > { %v1294_v23 = vsel %vm1271_vm15, %v1265_v52, %v1029_v40  ;;  %1686 = vst [vmem:[%s3392_s13 + $0x30] sm:$0xff] %v1623_v31 }
 0x2a2   : > { %1503 = vst [vmem:[#allocation1 + $0x3] ss:$4 sm:$0xff] %v1381_v32  ;;  %v1383_v42 = vrot.slane %v1294_v23, 2  ;;  %v1384_v7 = vrot.slane %v1294_v23, 4  ;;  %v1385_v33 = vrot.slane %v1294_v23, 6 }
 0x2a3   : > { %1504 = vst [vmem:[#allocation1 + $0x20] ss:$4 sm:$0xff] %v1382_v21 }
 0x2a4   : > { %1505 = vst [vmem:[#allocation1 + $0x21] ss:$4 sm:$0xff] %v1294_v23 }
 0x2a5   : > { %1506 = vst [vmem:[#allocation1 + $0x22] ss:$4 sm:$0xff] %v1383_v42 }
 0x2a6   : > { %1507 = vst [vmem:[#allocation1 + $0x23] ss:$4 sm:$0xff] %v1384_v7  ;;  %v857_v44 = vpop.permute.xlu1 %856  ;;  %v948_v60 = vpop.permute.xlu2 %947 }
 0x2a7   : > { %v771_v17 = vpop.permute.xlu0 %770 }
 0x2a8   : > { %v1626_v47 = vpop.f32.mrf.mxu1  ;;  %v1208_v8 = vsel %vm1184_vm6, %v2787_v55, %v771_v17 }
 0x2a9   : > { %1687 = vst [vmem:[%s3392_s13 + $0x38] sm:$0xff] %v1626_v47  ;;  %v1508_v28 = vld.sshfl [vmem:[#allocation1] sm:$0xff pattern:$0x73625140]  ;;  %v1237_v43 = vsel %vm1213_vm13, %v1208_v8, %v857_v44 }
 0x2aa   : > { %1855 = vmatmul.msk.f32.gmra.mxu2 %vm1533_vm7, %v1508_v28  ;;  %1510 = vst [vmem:[#allocation1] ss:$4 sm:$0xff] %v1385_v33  ;;  %v1266_v53 = vsel %vm1242_vm14, %v1237_v43, %v944_v10 }
 0x2ad   : > { %v1509_v6 = vld.sshfl [vmem:[#allocation1 + $0x20] sm:$0xff pattern:$0x73625140] }
 0x2ae   : > { %1856 = vmatmul.msk.f32.vlgmr.msra.gmra.mxu3 %vm1533_vm7, %v1509_v6  ;;  %v773_v13 = vpop.permute.xlu1 %772  ;;  %v950_v14 = vpop.permute.xlu2 %949 }
 0x2af   : > { %v1031_v62 = vpop.permute.xlu0 %1030  ;;  %v1209_v16 = vsel %vm1184_vm6, %v2904_v1, %v773_v13 }
 0x2b0   : > { %v1295_v36 = vsel %vm1271_vm15, %v1266_v53, %v1031_v62  ;;  %v1238_v59 = vsel %vm1213_vm13, %v1209_v16, %v859_v45 }
 0x2b1   : > { %v1386_v35 = vrot.slane %v1295_v36, 2  ;;  %v1387_v55 = vrot.slane %v1295_v36, 4  ;;  %1511 = vst [vmem:[#allocation1 + $0x1] ss:$4 sm:$0xff] %v1295_v36 }
 0x2b3   : > { %1512 = vst [vmem:[#allocation1 + $0x2] ss:$4 sm:$0xff] %v1386_v35 }
 0x2b4   : > { %1513 = vst [vmem:[#allocation1 + $0x3] ss:$4 sm:$0xff] %v1387_v55 }
 0x2b6   : > { %v1033_v20 = vpop.permute.xlu1 %1032 }
 0x2b7   : > { %v1629_v37 = vpop.f32.mrf.mxu1  ;;  %v946_v3 = vpop.permute.xlu0 %945 }
 0x2b8   : > { %1688 = vst [vmem:[%s3392_s13 + $0x40] sm:$0xff] %v1629_v37  ;;  %v1267_v19 = vsel %vm1242_vm14, %v1238_v59, %v946_v3 }
 0x2b9   : > { %v1296_v15 = vsel %vm1271_vm15, %v1267_v19, %v1033_v20 }
 0x2ba   : > { %v1388_v38 = vrot.slane %v1296_v15, 2  ;;  %v1389_v63 = vrot.slane %v1296_v15, 4  ;;  %v1390_v26 = vrot.slane %v1296_v15, 6  ;;  %1514 = vst [vmem:[#allocation1 + $0x20] ss:$4 sm:$0xff] %v1296_v15 }
 0x2bb   : > { %v1518_v50 = vld.sshfl [vmem:[#allocation1] sm:$0xff pattern:$0x73625140] }
 0x2bc   : > { %1515 = vst [vmem:[#allocation1 + $0x21] ss:$4 sm:$0xff] %v1388_v38  ;;  %1857 = vmatmul.msk.f32.gmra.mxu3 %vm1533_vm7, %v1518_v50 }
 0x2bd   : > { %1516 = vst [vmem:[#allocation1 + $0x22] ss:$4 sm:$0xff] %v1389_v63 }
 0x2be   : > { %1517 = vst [vmem:[#allocation1 + $0x23] ss:$4 sm:$0xff] %v1390_v26  ;;  %v777_v1 = vpop.permute.xlu1 %776 }
 0x2bf   : > { %v1632_v27 = vpop.f32.mrf.mxu1  ;;  %v861_v18 = vpop.permute.xlu0 %860  ;;  %v1211_v51 = vsel %vm1184_vm6, %v2806_v49, %v777_v1 }
 0x2c0   : > { %1689 = vst [vmem:[%s3392_s13 + $0x48] sm:$0xff] %v1632_v27  ;;  %v1239_v39 = vsel %vm1213_vm13, %v1210_v12, %v861_v18  ;;  %v865_v49 = vpop.permute.xlu2 %864 }
 0x2c1   : > { %v1268_v2 = vsel %vm1242_vm14, %v1239_v39, %v948_v60 }
 0x2c5   : > { %v1519_v9 = vld.sshfl [vmem:[#allocation1 + $0x20] sm:$0xff pattern:$0x73625140] }
 0x2c6   : > { %1858 = vmatmul.msk.f32.gmra.mxu3 %vm1533_vm7, %v1519_v9  ;;  %v1035_v30 = vpop.permute.xlu1 %1034 }
 0x2c7   : > { %v1297_v11 = vsel %vm1271_vm15, %v1268_v2, %v1035_v30  ;;  %v863_v22 = vpop.permute.xlu0 %862  ;;  %v1635_v58 = vpop.f32.mrf.mxu1 }
 0x2c8   : > { %v1391_v57 = vrot.slane %v1297_v11, 2  ;;  %v1392_v4 = vrot.slane %v1297_v11, 4  ;;  %1520 = vst [vmem:[#allocation1] ss:$4 sm:$0xff] %v1297_v11  ;;  %v1240_v61 = vsel %vm1213_vm13, %v1211_v51, %v863_v22 }
 0x2c9   : > { %1690 = vst [vmem:[%s3392_s13 + $0x50] sm:$0xff] %v1635_v58  ;;  %v1269_v41 = vsel %vm1242_vm14, %v1240_v61, %v950_v14 }
 0x2ca   : > { %1521 = vst [vmem:[#allocation1 + $0x1] ss:$4 sm:$0xff] %v1391_v57 }
 0x2cb   : > { %1522 = vst [vmem:[#allocation1 + $0x2] ss:$4 sm:$0xff] %v1392_v4 }
 0x2ce   : > { %v779_v40 = vpop.permute.xlu1 %778 }
 0x2cf   : > { %v1037_v54 = vpop.permute.xlu0 %1036  ;;  %v1638_v0 = vpop.f32.mrf.mxu1  ;;  %v1212_v46 = vsel %vm1184_vm6, %v2934_v56, %v779_v40 }
 0x2d0   : > { %v1298_v5 = vsel %vm1271_vm15, %v1269_v41, %v1037_v54  ;;  %1691 = vst [vmem:[%s3392_s13 + $0x58] sm:$0xff] %v1638_v0  ;;  %v1241_v32 = vsel %vm1213_vm13, %v1212_v46, %v865_v49 }
 0x2d1   : > { %v1393_v34 = vrot.slane %v1298_v5, 2  ;;  %v1394_v24 = vrot.slane %v1298_v5, 4  ;;  %v1395_v29 = vrot.slane %v1298_v5, 6  ;;  %1523 = vst [vmem:[#allocation1 + $0x3] ss:$4 sm:$0xff] %v1298_v5 }
 0x2d3   : > { %1524 = vst [vmem:[#allocation1 + $0x20] ss:$4 sm:$0xff] %v1393_v34 }
 0x2d4   : > { %1525 = vst [vmem:[#allocation1 + $0x21] ss:$4 sm:$0xff] %v1394_v24 }
 0x2d5   : > { %1526 = vst [vmem:[#allocation1 + $0x22] ss:$4 sm:$0xff] %v1395_v29 }
 0x2d6   : > { %v1039_v25 = vpop.permute.xlu1 %1038 }
 0x2d7   : > { %v952_v21 = vpop.permute.xlu0 %951 }
 0x2d8   : > { %v1270_v52 = vsel %vm1242_vm14, %v1241_v32, %v952_v21  ;;  %v1528_v31 = vld.sshfl [vmem:[#allocation1] sm:$0xff pattern:$0x73625140] }
 0x2d9   : > { %v1299_v23 = vsel %vm1271_vm15, %v1270_v52, %v1039_v25  ;;  %1859 = vmatmul.msk.f32.gmra.mxu3 %vm1533_vm7, %v1528_v31 }
 0x2da   : > { %v1396_v42 = vrot.slane %v1299_v23, 2  ;;  %v1397_v56 = vrot.slane %v1299_v23, 4  ;;  %1527 = vst [vmem:[#allocation1 + $0x23] ss:$4 sm:$0xff] %v1299_v23 }
 0x2dc   : > { %1530 = vst [vmem:[#allocation1] ss:$4 sm:$0xff] %v1396_v42 }
 0x2dd   : > { %1531 = vst [vmem:[#allocation1 + $0x1] ss:$4 sm:$0xff] %v1397_v56 }
 0x2e1   : > { %v1529_v7 = vld.sshfl [vmem:[#allocation1 + $0x20] sm:$0xff pattern:$0x73625140] }
 0x2e2   : > { %1860 = vmatmul.msk.f32.gmra.mxu3 %vm1533_vm7, %v1529_v7 }
 0x2e4   : > { %v1532_v44 = vld.sshfl [vmem:[#allocation1] sm:$0xff pattern:$0x73625140] }
 0x2e8   : > { %v1641_v10 = vpop.f32.mrf.mxu2 }
 0x2e9   : > { %1692 = vst [vmem:[%s3392_s13 + $0x60] sm:$0xff] %v1641_v10 }
 0x2ea   : > { %1861 = vmatmul.msk.f32.gmra.mxu3 %vm1533_vm7, %v1532_v44 }
 0x2f0   : > { %v1644_v17 = vpop.f32.mrf.mxu2 }
 0x2f1   : > { %1693 = vst [vmem:[%s3392_s13 + $0x68] sm:$0xff] %v1644_v17 }
 0x2ff   : > { %v1647_v33 = vpop.f32.mrf.mxu2 }
 0x300   : > { %1694 = vst [vmem:[%s3392_s13 + $0x70] sm:$0xff] %v1647_v33 }
 0x307   : > { %v1650_v47 = vpop.f32.mrf.mxu2 }
 0x308   : > { %1695 = vst [vmem:[%s3392_s13 + $0x78] sm:$0xff] %v1650_v47 }
 0x316   : > { %v1653_v8 = vpop.f32.mrf.mxu2 }
 0x317   : > { %1696 = vst [vmem:[%s3392_s13 + $0x80] sm:$0xff] %v1653_v8 }
 0x31e   : > { %v1656_v28 = vpop.f32.mrf.mxu2 }
 0x31f   : > { %1697 = vst [vmem:[%s3392_s13 + $0x88] sm:$0xff] %v1656_v28 }
 0x32d   : > { %v1659_v43 = vpop.f32.mrf.mxu2 }
 0x32e   : > { %1698 = vst [vmem:[%s3392_s13 + $0x90] sm:$0xff] %v1659_v43 }
 0x331   : > { %v1662_v6 = vpop.f32.mrf.mxu3 }
 0x332   : > { %1699 = vst [vmem:[%s3392_s13 + $0x98] sm:$0xff] %v1662_v6 }
 0x33f   : > { %v1665_v45 = vpop.f32.mrf.mxu3 }
 0x340   : > { %1700 = vst [vmem:[%s3392_s13 + $0xa0] sm:$0xff] %v1665_v45 }
 0x349   : > { %v1668_v13 = vpop.f32.mrf.mxu3 }
 0x34a   : > { %1701 = vst [vmem:[%s3392_s13 + $0xa8] sm:$0xff] %v1668_v13 }
 0x35c   : > { %v1671_v53 = vpop.f32.mrf.mxu3 }
 0x35d   : > { %1702 = vst [vmem:[%s3392_s13 + $0xb0] sm:$0xff] %v1671_v53 }
 0x365   : > { %v1674_v62 = vpop.f32.mrf.mxu3 }
 0x366   : > { %1703 = vst [vmem:[%s3392_s13 + $0xb8] sm:$0xff] %v1674_v62 }
 0x36d   : > { %v1677_v36 = vpop.f32.mrf.mxu3 }
 0x36e   : > { %1704 = vst [vmem:[%s3392_s13 + $0xc0] sm:$0xf] %v1677_v36 }
 0x36f PF: > { %s12_s11 = sadd.s32 1, %s1955_s11   ;;  %s3842_s9 = smov %s1951_s10 }
 0x370   : > { %p9_p5 = scmp.ge.s32.totalorder %s12_s11, 4   ;;  %s3843_s10 = smov %s3845_s12 }
 0x372   :  { %11 = sbr.rel (!%p9_p5) target bundleno = 2 (0x2), region = 74 }

</bundles_post_ra>
